<compile_context>
chip_gen: v6e
topology: v6e:2x2x1
jax: 0.10.0
libtpu: 0.0.40
codegen_flags: <defaults>
</compile_context>

<pallas_src>
import jax
import jax.numpy as jnp
import numpy as np
from jax.experimental import pallas as pl
from jax.experimental.pallas import tpu as pltpu


def _make_kernel(shifts, s_center, tm, cin, cout, k, k_pad):
    """Builds the per-(batch, chunk) kernel with all shape constants closed over."""

    def kernel(w_ref, xa_ref, xb_ref, o_ref, win_ref, patch_ref):
        # w_ref:     (Cout, K_pad)  bf16  resident weight
        # xa_ref:    (1, Cin, TM)   f32   flattened padded activation, chunk i
        # xb_ref:    (1, Cin, TM)   f32   chunk i+1 (halo for the shifted taps)
        # o_ref:     (1, Cin+Cout, TM) f32
        # win_ref:   (Cin, 2*TM)    f32   VMEM rolling window scratch
        # patch_ref: (K_pad, TM)    bf16  VMEM im2col patch scratch

        # Assemble the 2*TM window of the flattened padded activation.
        win_ref[:, :tm] = xa_ref[0]
        win_ref[:, tm:] = xb_ref[0]

        # Passthrough channels: the centre tap is exactly x[d, h, w] (f32, exact).
        o_ref[0, :cin, :] = win_ref[:, s_center:s_center + tm]

        # Zero the K padding rows (scratch is uninitialized; 0 * NaN would poison).
        if k_pad > k:
            patch_ref[k:, :] = jnp.zeros((k_pad - k, tm), jnp.bfloat16)

        # 27 statically-shifted taps -> (K, TM) patch, (dz, dy, dx, ci) row order.
        for t, s in enumerate(shifts):
            patch_ref[t * cin:(t + 1) * cin, :] = (
                win_ref[:, s:s + tm].astype(jnp.bfloat16))

        # Conv as one MXU matmul: (Cout, K_pad) x (K_pad, TM), f32 accumulation.
        acc = jnp.dot(w_ref[...], patch_ref[...],
                      preferred_element_type=jnp.float32)
        o_ref[0, cin:, :] = jnp.maximum(acc, 0.0)          # ReLU

    return kernel


def make_dense_forward(x, weight, *, tile_m=2048):
    """make_dense forward: concat(x, relu(conv3d(x, weight, padding=1)), axis=1)."""
    N, Cin, D, H, W = x.shape
    Cout, Cin_w, kd, kh, kw = weight.shape
    assert (Cin_w, kd, kh, kw) == (Cin, 3, 3, 3)
    Ctot = Cin + Cout

    P = (H + 2) * (W + 2)            # padded HW plane, flattened
    Q = (D + 2) * P                  # padded volume, flattened
    M_out = D * P                    # output positions on the (W+2)-strided grid
    K = Cin * kd * kh * kw

    # Flat-axis shift of tap (dz, dy, dx); max shift bounds the halo needed
    # beyond a TM chunk (always < TM by construction below).
    shifts = [dz * P + dy * (W + 2) + dx
              for dz in range(3) for dy in range(3) for dx in range(3)]
    s_center = P + (W + 2) + 1       # tap (1,1,1) == x[d, h, w]
    s_max = shifts[-1]

    def rup(a, b):
        return ((a + b - 1) // b) * b

    # TM: big (amortize ~0.35us/step), multiple of 128 (unmasked lane-dense vst),
    # >= s_max (halo fits in the 2*TM window), capped so the grid keeps >= 2
    # chunks (x batch => >= 4 steps for v7x's two TensorCores).
    tm_min = rup(s_max + 1, 128)
    tm_cap = max(tm_min, rup((M_out + 1) // 2, 128))
    tm = max(tm_min, min(rup(tile_m, 128), tm_cap))
    n_chunks = (M_out + tm - 1) // tm
    m_pad = n_chunks * tm

    # Zero-pad spatially (Conv3d padding=1), flatten, pad the tail so the
    # "next chunk" view (block i+1) is always in range.  O(x) bytes, not 27x.
    xp = jnp.pad(x.astype(jnp.float32),
                 ((0, 0), (0, 0), (1, 1), (1, 1), (1, 1)))
    xp_flat = xp.reshape(N, Cin, Q)
    Mx = (n_chunks + 1) * tm
    xp_flat = jnp.pad(xp_flat, ((0, 0), (0, 0), (0, Mx - Q)))

    # Weight -> (Cout, K) in (dz, dy, dx, ci) order (matches patch rows), bf16,
    # contracting dim zero-padded to a multiple of 128.
    K_pad = rup(K, 128)
    w_mat = weight.transpose(0, 2, 3, 4, 1).reshape(Cout, K).astype(jnp.bfloat16)
    w_mat = jnp.pad(w_mat, ((0, 0), (0, K_pad - K)))

    kernel = _make_kernel(shifts, s_center, tm, Cin, Cout, K, K_pad)

    # Explicit VMEM limit with headroom (stays well under v7x's 64 MiB physical).
    est = (2 * 2 * Cin * tm * 4        # xa/xb, double-buffered
           + 2 * Ctot * tm * 4         # output, double-buffered
           + Cin * 2 * tm * 4          # window scratch
           + K_pad * tm * 2            # patch scratch
           + 2 * Cout * K_pad * 2)     # weight
    vmem_limit = int(min(max(4 * est, 16 * 1024 * 1024), 48 * 1024 * 1024))

    y_flat = pl.pallas_call(
        kernel,
        out_shape=jax.ShapeDtypeStruct((N, Ctot, m_pad), jnp.float32),
        grid=(N, n_chunks),
        in_specs=[
            pl.BlockSpec((Cout, K_pad), lambda n, i: (0, 0)),        # resident weight
            pl.BlockSpec((1, Cin, tm), lambda n, i: (n, 0, i)),      # chunk i
            pl.BlockSpec((1, Cin, tm), lambda n, i: (n, 0, i + 1)),  # chunk i+1 halo
        ],
        out_specs=pl.BlockSpec((1, Ctot, tm), lambda n, i: (n, 0, i)),
        scratch_shapes=[
            pltpu.VMEM((Cin, 2 * tm), jnp.float32),     # rolling activation window
            pltpu.VMEM((K_pad, tm), jnp.bfloat16),      # im2col patch tile
        ],
        compiler_params=pltpu.CompilerParams(
            dimension_semantics=("parallel", "parallel"),
            vmem_limit_bytes=vmem_limit),
    )(w_mat, xp_flat, xp_flat)

    # Interior extraction: drop the (H+2, W+2)-stride junk columns.
    # TODO(synk): fold this compaction into the kernel's store (strided per-row
    # writes) to remove the last remaining post-kernel HBM pass.
    y = y_flat[:, :, :M_out].reshape(N, Ctot, D, H + 2, W + 2)[:, :, :, :H, :W]
    return y.astype(x.dtype)


def _reference(x, weight):
    """Pure-JAX reference of the same forward pass."""
    y = jax.lax.conv_general_dilated(
        x, weight, window_strides=(1, 1, 1),
        padding=((1, 1), (1, 1), (1, 1)),
        dimension_numbers=("NCDHW", "OIDHW", "NCDHW"))
    y = jnp.maximum(y, 0.0)
    return jnp.concatenate([x, y], axis=1)


if __name__ == "__main__":
    # make_dense(nChannels=4, growthRate=8) on a small 3D volume.
    N, nChannels, growthRate = 2, 4, 8
    D, H, W = 8, 16, 16

    key = jax.random.PRNGKey(0)
    kx, kw_ = jax.random.split(key)
    x = jax.random.normal(kx, (N, nChannels, D, H, W), dtype=jnp.float32)
    weight = 0.05 * jax.random.normal(
        kw_, (growthRate, nChannels, 3, 3, 3), dtype=jnp.float32)

    out = jax.block_until_ready(jax.jit(make_dense_forward)(x, weight))
    ref = jax.block_until_ready(_reference(x, weight))

    assert out.shape == ref.shape, (out.shape, ref.shape)
    # bf16 matmul inputs (f32 accumulation) -> loosened tolerance vs f32 reference.
    np.testing.assert_allclose(np.asarray(out), np.asarray(ref), rtol=2e-2, atol=2e-2)
    # Passthrough channels of the concat must be bit-exact.
    np.testing.assert_array_equal(np.asarray(out[:, :nChannels]), np.asarray(x))

    print("KERNEL_OK")
</pallas_src>

<mosaic_0001>
module attributes {stable_mosaic.version = 11 : i64} {
  func.func @kernel(%arg0: i32, %arg1: i32, %arg2: memref<8x128xbf16, #tpu.memory_space<vmem>>, %arg3: memref<1x4x1408xf32, #tpu.memory_space<vmem>>, %arg4: memref<1x4x1408xf32, #tpu.memory_space<vmem>>, %arg5: memref<1x12x1408xf32, #tpu.memory_space<vmem>>, %arg6: memref<4x2816xf32, #tpu.memory_space<vmem>>, %arg7: memref<128x1408xbf16, #tpu.memory_space<vmem>>) attributes {dimension_semantics = [#tpu.dimension_semantics<parallel>, #tpu.dimension_semantics<parallel>], iteration_bounds = array<i64: 2, 2>, scalar_prefetch = 0 : i64, scratch_operands = 2 : i64, tpu.core_type = #tpu.core_type<tc>, window_params = [{pipeline_mode = #tpu.pipeline_mode<synchronous>, transform_indices = @transform_0, window_bounds = array<i64: 8, 128>}, {transform_indices = @transform_1, window_bounds = array<i64: 1, 4, 1408>}, {transform_indices = @transform_2, window_bounds = array<i64: 1, 4, 1408>}, {transform_indices = @transform_3, window_bounds = array<i64: 1, 12, 1408>}]} {
    %c0 = arith.constant 0 : index
    %c0_0 = arith.constant 0 : index
    %c0_1 = arith.constant 0 : index
    %0 = vector.load %arg3[%c0, %c0_0, %c0_1] : memref<1x4x1408xf32, #tpu.memory_space<vmem>>, vector<1x4x1408xf32>
    %1 = vector.shape_cast %0 : vector<1x4x1408xf32> to vector<4x1408xf32>
    %c0_2 = arith.constant 0 : index
    %c0_3 = arith.constant 0 : index
    %2 = vector.load %arg6[%c0_2, %c0_3] : memref<4x2816xf32, #tpu.memory_space<vmem>>, vector<4x1408xf32>
    tpu.vector_store %arg6[%c0_2, %c0_3], %1 {strides = array<i32>} : memref<4x2816xf32, #tpu.memory_space<vmem>>, vector<4x1408xf32>,
    %c0_4 = arith.constant 0 : index
    %c0_5 = arith.constant 0 : index
    %c0_6 = arith.constant 0 : index
    %3 = vector.load %arg4[%c0_4, %c0_5, %c0_6] : memref<1x4x1408xf32, #tpu.memory_space<vmem>>, vector<1x4x1408xf32>
    %4 = vector.shape_cast %3 : vector<1x4x1408xf32> to vector<4x1408xf32>
    %c0_7 = arith.constant 0 : index
    %c1408 = arith.constant 1408 : index
    %5 = vector.load %arg6[%c0_7, %c1408] : memref<4x2816xf32, #tpu.memory_space<vmem>>, vector<4x1408xf32>
    tpu.vector_store %arg6[%c0_7, %c1408], %4 {strides = array<i32>} : memref<4x2816xf32, #tpu.memory_space<vmem>>, vector<4x1408xf32>,
    %c0_8 = arith.constant 0 : index
    %c343 = arith.constant 343 : index
    %6 = vector.load %arg6[%c0_8, %c343] : memref<4x2816xf32, #tpu.memory_space<vmem>>, vector<4x1408xf32>
    %c0_9 = arith.constant 0 : index
    %c0_10 = arith.constant 0 : index
    %c0_11 = arith.constant 0 : index
    %7 = vector.load %arg5[%c0_9, %c0_10, %c0_11] : memref<1x12x1408xf32, #tpu.memory_space<vmem>>, vector<1x4x1408xf32>
    %8 = vector.shape_cast %7 : vector<1x4x1408xf32> to vector<4x1408xf32>
    %9 = vector.shape_cast %6 : vector<4x1408xf32> to vector<1x4x1408xf32>
    tpu.vector_store %arg5[%c0_9, %c0_10, %c0_11], %9 {strides = array<i32>} : memref<1x12x1408xf32, #tpu.memory_space<vmem>>, vector<1x4x1408xf32>,
    %cst = arith.constant 0.000000e+00 : bf16
    %10 = vector.broadcast %cst : bf16 to vector<20x1408xbf16>
    %c108 = arith.constant 108 : index
    %c0_12 = arith.constant 0 : index
    %11 = vector.load %arg7[%c108, %c0_12] : memref<128x1408xbf16, #tpu.memory_space<vmem>>, vector<20x1408xbf16>
    tpu.vector_store %arg7[%c108, %c0_12], %10 {strides = array<i32>} : memref<128x1408xbf16, #tpu.memory_space<vmem>>, vector<20x1408xbf16>,
    %c0_13 = arith.constant 0 : index
    %c0_14 = arith.constant 0 : index
    %12 = vector.load %arg6[%c0_13, %c0_14] : memref<4x2816xf32, #tpu.memory_space<vmem>>, vector<4x1408xf32>
    %13 = arith.truncf %12 : vector<4x1408xf32> to vector<4x1408xbf16>
    %c0_15 = arith.constant 0 : index
    %c0_16 = arith.constant 0 : index
    %14 = vector.load %arg7[%c0_15, %c0_16] : memref<128x1408xbf16, #tpu.memory_space<vmem>>, vector<4x1408xbf16>
    tpu.vector_store %arg7[%c0_15, %c0_16], %13 {strides = array<i32>} : memref<128x1408xbf16, #tpu.memory_space<vmem>>, vector<4x1408xbf16>,
    %c0_17 = arith.constant 0 : index
    %c1 = arith.constant 1 : index
    %15 = vector.load %arg6[%c0_17, %c1] : memref<4x2816xf32, #tpu.memory_space<vmem>>, vector<4x1408xf32>
    %16 = arith.truncf %15 : vector<4x1408xf32> to vector<4x1408xbf16>
    %c4 = arith.constant 4 : index
    %c0_18 = arith.constant 0 : index
    %17 = vector.load %arg7[%c4, %c0_18] : memref<128x1408xbf16, #tpu.memory_space<vmem>>, vector<4x1408xbf16>
    tpu.vector_store %arg7[%c4, %c0_18], %16 {strides = array<i32>} : memref<128x1408xbf16, #tpu.memory_space<vmem>>, vector<4x1408xbf16>,
    %c0_19 = arith.constant 0 : index
    %c2 = arith.constant 2 : index
    %18 = vector.load %arg6[%c0_19, %c2] : memref<4x2816xf32, #tpu.memory_space<vmem>>, vector<4x1408xf32>
    %19 = arith.truncf %18 : vector<4x1408xf32> to vector<4x1408xbf16>
    %c8 = arith.constant 8 : index
    %c0_20 = arith.constant 0 : index
    %20 = vector.load %arg7[%c8, %c0_20] : memref<128x1408xbf16, #tpu.memory_space<vmem>>, vector<4x1408xbf16>
    tpu.vector_store %arg7[%c8, %c0_20], %19 {strides = array<i32>} : memref<128x1408xbf16, #tpu.memory_space<vmem>>, vector<4x1408xbf16>,
    %c0_21 = arith.constant 0 : index
    %c18 = arith.constant 18 : index
    %21 = vector.load %arg6[%c0_21, %c18] : memref<4x2816xf32, #tpu.memory_space<vmem>>, vector<4x1408xf32>
    %22 = arith.truncf %21 : vector<4x1408xf32> to vector<4x1408xbf16>
    %c12 = arith.constant 12 : index
    %c0_22 = arith.constant 0 : index
    %23 = vector.load %arg7[%c12, %c0_22] : memref<128x1408xbf16, #tpu.memory_space<vmem>>, vector<4x1408xbf16>
    tpu.vector_store %arg7[%c12, %c0_22], %22 {strides = array<i32>} : memref<128x1408xbf16, #tpu.memory_space<vmem>>, vector<4x1408xbf16>,
    %c0_23 = arith.constant 0 : index
    %c19 = arith.constant 19 : index
    %24 = vector.load %arg6[%c0_23, %c19] : memref<4x2816xf32, #tpu.memory_space<vmem>>, vector<4x1408xf32>
    %25 = arith.truncf %24 : vector<4x1408xf32> to vector<4x1408xbf16>
    %c16 = arith.constant 16 : index
    %c0_24 = arith.constant 0 : index
    %26 = vector.load %arg7[%c16, %c0_24] : memref<128x1408xbf16, #tpu.memory_space<vmem>>, vector<4x1408xbf16>
    tpu.vector_store %arg7[%c16, %c0_24], %25 {strides = array<i32>} : memref<128x1408xbf16, #tpu.memory_space<vmem>>, vector<4x1408xbf16>,
    %c0_25 = arith.constant 0 : index
    %c20 = arith.constant 20 : index
    %27 = vector.load %arg6[%c0_25, %c20] : memref<4x2816xf32, #tpu.memory_space<vmem>>, vector<4x1408xf32>
    %28 = arith.truncf %27 : vector<4x1408xf32> to vector<4x1408xbf16>
    %c20_26 = arith.constant 20 : index
    %c0_27 = arith.constant 0 : index
    %29 = vector.load %arg7[%c20_26, %c0_27] : memref<128x1408xbf16, #tpu.memory_space<vmem>>, vector<4x1408xbf16>
    tpu.vector_store %arg7[%c20_26, %c0_27], %28 {strides = array<i32>} : memref<128x1408xbf16, #tpu.memory_space<vmem>>, vector<4x1408xbf16>,
    %c0_28 = arith.constant 0 : index
    %c36 = arith.constant 36 : index
    %30 = vector.load %arg6[%c0_28, %c36] : memref<4x2816xf32, #tpu.memory_space<vmem>>, vector<4x1408xf32>
    %31 = arith.truncf %30 : vector<4x1408xf32> to vector<4x1408xbf16>
    %c24 = arith.constant 24 : index
    %c0_29 = arith.constant 0 : index
    %32 = vector.load %arg7[%c24, %c0_29] : memref<128x1408xbf16, #tpu.memory_space<vmem>>, vector<4x1408xbf16>
    tpu.vector_store %arg7[%c24, %c0_29], %31 {strides = array<i32>} : memref<128x1408xbf16, #tpu.memory_space<vmem>>, vector<4x1408xbf16>,
    %c0_30 = arith.constant 0 : index
    %c37 = arith.constant 37 : index
    %33 = vector.load %arg6[%c0_30, %c37] : memref<4x2816xf32, #tpu.memory_space<vmem>>, vector<4x1408xf32>
    %34 = arith.truncf %33 : vector<4x1408xf32> to vector<4x1408xbf16>
    %c28 = arith.constant 28 : index
    %c0_31 = arith.constant 0 : index
    %35 = vector.load %arg7[%c28, %c0_31] : memref<128x1408xbf16, #tpu.memory_space<vmem>>, vector<4x1408xbf16>
    tpu.vector_store %arg7[%c28, %c0_31], %34 {strides = array<i32>} : memref<128x1408xbf16, #tpu.memory_space<vmem>>, vector<4x1408xbf16>,
    %c0_32 = arith.constant 0 : index
    %c38 = arith.constant 38 : index
    %36 = vector.load %arg6[%c0_32, %c38] : memref<4x2816xf32, #tpu.memory_space<vmem>>, vector<4x1408xf32>
    %37 = arith.truncf %36 : vector<4x1408xf32> to vector<4x1408xbf16>
    %c32 = arith.constant 32 : index
    %c0_33 = arith.constant 0 : index
    %38 = vector.load %arg7[%c32, %c0_33] : memref<128x1408xbf16, #tpu.memory_space<vmem>>, vector<4x1408xbf16>
    tpu.vector_store %arg7[%c32, %c0_33], %37 {strides = array<i32>} : memref<128x1408xbf16, #tpu.memory_space<vmem>>, vector<4x1408xbf16>,
    %c0_34 = arith.constant 0 : index
    %c324 = arith.constant 324 : index
    %39 = vector.load %arg6[%c0_34, %c324] : memref<4x2816xf32, #tpu.memory_space<vmem>>, vector<4x1408xf32>
    %40 = arith.truncf %39 : vector<4x1408xf32> to vector<4x1408xbf16>
    %c36_35 = arith.constant 36 : index
    %c0_36 = arith.constant 0 : index
    %41 = vector.load %arg7[%c36_35, %c0_36] : memref<128x1408xbf16, #tpu.memory_space<vmem>>, vector<4x1408xbf16>
    tpu.vector_store %arg7[%c36_35, %c0_36], %40 {strides = array<i32>} : memref<128x1408xbf16, #tpu.memory_space<vmem>>, vector<4x1408xbf16>,
    %c0_37 = arith.constant 0 : index
    %c325 = arith.constant 325 : index
    %42 = vector.load %arg6[%c0_37, %c325] : memref<4x2816xf32, #tpu.memory_space<vmem>>, vector<4x1408xf32>
    %43 = arith.truncf %42 : vector<4x1408xf32> to vector<4x1408xbf16>
    %c40 = arith.constant 40 : index
    %c0_38 = arith.constant 0 : index
    %44 = vector.load %arg7[%c40, %c0_38] : memref<128x1408xbf16, #tpu.memory_space<vmem>>, vector<4x1408xbf16>
    tpu.vector_store %arg7[%c40, %c0_38], %43 {strides = array<i32>} : memref<128x1408xbf16, #tpu.memory_space<vmem>>, vector<4x1408xbf16>,
    %c0_39 = arith.constant 0 : index
    %c326 = arith.constant 326 : index
    %45 = vector.load %arg6[%c0_39, %c326] : memref<4x2816xf32, #tpu.memory_space<vmem>>, vector<4x1408xf32>
    %46 = arith.truncf %45 : vector<4x1408xf32> to vector<4x1408xbf16>
    %c44 = arith.constant 44 : index
    %c0_40 = arith.constant 0 : index
    %47 = vector.load %arg7[%c44, %c0_40] : memref<128x1408xbf16, #tpu.memory_space<vmem>>, vector<4x1408xbf16>
    tpu.vector_store %arg7[%c44, %c0_40], %46 {strides = array<i32>} : memref<128x1408xbf16, #tpu.memory_space<vmem>>, vector<4x1408xbf16>,
    %c0_41 = arith.constant 0 : index
    %c342 = arith.constant 342 : index
    %48 = vector.load %arg6[%c0_41, %c342] : memref<4x2816xf32, #tpu.memory_space<vmem>>, vector<4x1408xf32>
    %49 = arith.truncf %48 : vector<4x1408xf32> to vector<4x1408xbf16>
    %c48 = arith.constant 48 : index
    %c0_42 = arith.constant 0 : index
    %50 = vector.load %arg7[%c48, %c0_42] : memref<128x1408xbf16, #tpu.memory_space<vmem>>, vector<4x1408xbf16>
    tpu.vector_store %arg7[%c48, %c0_42], %49 {strides = array<i32>} : memref<128x1408xbf16, #tpu.memory_space<vmem>>, vector<4x1408xbf16>,
    %c0_43 = arith.constant 0 : index
    %c343_44 = arith.constant 343 : index
    %51 = vector.load %arg6[%c0_43, %c343_44] : memref<4x2816xf32, #tpu.memory_space<vmem>>, vector<4x1408xf32>
    %52 = arith.truncf %51 : vector<4x1408xf32> to vector<4x1408xbf16>
    %c52 = arith.constant 52 : index
    %c0_45 = arith.constant 0 : index
    %53 = vector.load %arg7[%c52, %c0_45] : memref<128x1408xbf16, #tpu.memory_space<vmem>>, vector<4x1408xbf16>
    tpu.vector_store %arg7[%c52, %c0_45], %52 {strides = array<i32>} : memref<128x1408xbf16, #tpu.memory_space<vmem>>, vector<4x1408xbf16>,
    %c0_46 = arith.constant 0 : index
    %c344 = arith.constant 344 : index
    %54 = vector.load %arg6[%c0_46, %c344] : memref<4x2816xf32, #tpu.memory_space<vmem>>, vector<4x1408xf32>
    %55 = arith.truncf %54 : vector<4x1408xf32> to vector<4x1408xbf16>
    %c56 = arith.constant 56 : index
    %c0_47 = arith.constant 0 : index
    %56 = vector.load %arg7[%c56, %c0_47] : memref<128x1408xbf16, #tpu.memory_space<vmem>>, vector<4x1408xbf16>
    tpu.vector_store %arg7[%c56, %c0_47], %55 {strides = array<i32>} : memref<128x1408xbf16, #tpu.memory_space<vmem>>, vector<4x1408xbf16>,
    %c0_48 = arith.constant 0 : index
    %c360 = arith.constant 360 : index
    %57 = vector.load %arg6[%c0_48, %c360] : memref<4x2816xf32, #tpu.memory_space<vmem>>, vector<4x1408xf32>
    %58 = arith.truncf %57 : vector<4x1408xf32> to vector<4x1408xbf16>
    %c60 = arith.constant 60 : index
    %c0_49 = arith.constant 0 : index
    %59 = vector.load %arg7[%c60, %c0_49] : memref<128x1408xbf16, #tpu.memory_space<vmem>>, vector<4x1408xbf16>
    tpu.vector_store %arg7[%c60, %c0_49], %58 {strides = array<i32>} : memref<128x1408xbf16, #tpu.memory_space<vmem>>, vector<4x1408xbf16>,
    %c0_50 = arith.constant 0 : index
    %c361 = arith.constant 361 : index
    %60 = vector.load %arg6[%c0_50, %c361] : memref<4x2816xf32, #tpu.memory_space<vmem>>, vector<4x1408xf32>
    %61 = arith.truncf %60 : vector<4x1408xf32> to vector<4x1408xbf16>
    %c64 = arith.constant 64 : index
    %c0_51 = arith.constant 0 : index
    %62 = vector.load %arg7[%c64, %c0_51] : memref<128x1408xbf16, #tpu.memory_space<vmem>>, vector<4x1408xbf16>
    tpu.vector_store %arg7[%c64, %c0_51], %61 {strides = array<i32>} : memref<128x1408xbf16, #tpu.memory_space<vmem>>, vector<4x1408xbf16>,
    %c0_52 = arith.constant 0 : index
    %c362 = arith.constant 362 : index
    %63 = vector.load %arg6[%c0_52, %c362] : memref<4x2816xf32, #tpu.memory_space<vmem>>, vector<4x1408xf32>
    %64 = arith.truncf %63 : vector<4x1408xf32> to vector<4x1408xbf16>
    %c68 = arith.constant 68 : index
    %c0_53 = arith.constant 0 : index
    %65 = vector.load %arg7[%c68, %c0_53] : memref<128x1408xbf16, #tpu.memory_space<vmem>>, vector<4x1408xbf16>
    tpu.vector_store %arg7[%c68, %c0_53], %64 {strides = array<i32>} : memref<128x1408xbf16, #tpu.memory_space<vmem>>, vector<4x1408xbf16>,
    %c0_54 = arith.constant 0 : index
    %c648 = arith.constant 648 : index
    %66 = vector.load %arg6[%c0_54, %c648] : memref<4x2816xf32, #tpu.memory_space<vmem>>, vector<4x1408xf32>
    %67 = arith.truncf %66 : vector<4x1408xf32> to vector<4x1408xbf16>
    %c72 = arith.constant 72 : index
    %c0_55 = arith.constant 0 : index
    %68 = vector.load %arg7[%c72, %c0_55] : memref<128x1408xbf16, #tpu.memory_space<vmem>>, vector<4x1408xbf16>
    tpu.vector_store %arg7[%c72, %c0_55], %67 {strides = array<i32>} : memref<128x1408xbf16, #tpu.memory_space<vmem>>, vector<4x1408xbf16>,
    %c0_56 = arith.constant 0 : index
    %c649 = arith.constant 649 : index
    %69 = vector.load %arg6[%c0_56, %c649] : memref<4x2816xf32, #tpu.memory_space<vmem>>, vector<4x1408xf32>
    %70 = arith.truncf %69 : vector<4x1408xf32> to vector<4x1408xbf16>
    %c76 = arith.constant 76 : index
    %c0_57 = arith.constant 0 : index
    %71 = vector.load %arg7[%c76, %c0_57] : memref<128x1408xbf16, #tpu.memory_space<vmem>>, vector<4x1408xbf16>
    tpu.vector_store %arg7[%c76, %c0_57], %70 {strides = array<i32>} : memref<128x1408xbf16, #tpu.memory_space<vmem>>, vector<4x1408xbf16>,
    %c0_58 = arith.constant 0 : index
    %c650 = arith.constant 650 : index
    %72 = vector.load %arg6[%c0_58, %c650] : memref<4x2816xf32, #tpu.memory_space<vmem>>, vector<4x1408xf32>
    %73 = arith.truncf %72 : vector<4x1408xf32> to vector<4x1408xbf16>
    %c80 = arith.constant 80 : index
    %c0_59 = arith.constant 0 : index
    %74 = vector.load %arg7[%c80, %c0_59] : memref<128x1408xbf16, #tpu.memory_space<vmem>>, vector<4x1408xbf16>
    tpu.vector_store %arg7[%c80, %c0_59], %73 {strides = array<i32>} : memref<128x1408xbf16, #tpu.memory_space<vmem>>, vector<4x1408xbf16>,
    %c0_60 = arith.constant 0 : index
    %c666 = arith.constant 666 : index
    %75 = vector.load %arg6[%c0_60, %c666] : memref<4x2816xf32, #tpu.memory_space<vmem>>, vector<4x1408xf32>
    %76 = arith.truncf %75 : vector<4x1408xf32> to vector<4x1408xbf16>
    %c84 = arith.constant 84 : index
    %c0_61 = arith.constant 0 : index
    %77 = vector.load %arg7[%c84, %c0_61] : memref<128x1408xbf16, #tpu.memory_space<vmem>>, vector<4x1408xbf16>
    tpu.vector_store %arg7[%c84, %c0_61], %76 {strides = array<i32>} : memref<128x1408xbf16, #tpu.memory_space<vmem>>, vector<4x1408xbf16>,
    %c0_62 = arith.constant 0 : index
    %c667 = arith.constant 667 : index
    %78 = vector.load %arg6[%c0_62, %c667] : memref<4x2816xf32, #tpu.memory_space<vmem>>, vector<4x1408xf32>
    %79 = arith.truncf %78 : vector<4x1408xf32> to vector<4x1408xbf16>
    %c88 = arith.constant 88 : index
    %c0_63 = arith.constant 0 : index
    %80 = vector.load %arg7[%c88, %c0_63] : memref<128x1408xbf16, #tpu.memory_space<vmem>>, vector<4x1408xbf16>
    tpu.vector_store %arg7[%c88, %c0_63], %79 {strides = array<i32>} : memref<128x1408xbf16, #tpu.memory_space<vmem>>, vector<4x1408xbf16>,
    %c0_64 = arith.constant 0 : index
    %c668 = arith.constant 668 : index
    %81 = vector.load %arg6[%c0_64, %c668] : memref<4x2816xf32, #tpu.memory_space<vmem>>, vector<4x1408xf32>
    %82 = arith.truncf %81 : vector<4x1408xf32> to vector<4x1408xbf16>
    %c92 = arith.constant 92 : index
    %c0_65 = arith.constant 0 : index
    %83 = vector.load %arg7[%c92, %c0_65] : memref<128x1408xbf16, #tpu.memory_space<vmem>>, vector<4x1408xbf16>
    tpu.vector_store %arg7[%c92, %c0_65], %82 {strides = array<i32>} : memref<128x1408xbf16, #tpu.memory_space<vmem>>, vector<4x1408xbf16>,
    %c0_66 = arith.constant 0 : index
    %c684 = arith.constant 684 : index
    %84 = vector.load %arg6[%c0_66, %c684] : memref<4x2816xf32, #tpu.memory_space<vmem>>, vector<4x1408xf32>
    %85 = arith.truncf %84 : vector<4x1408xf32> to vector<4x1408xbf16>
    %c96 = arith.constant 96 : index
    %c0_67 = arith.constant 0 : index
    %86 = vector.load %arg7[%c96, %c0_67] : memref<128x1408xbf16, #tpu.memory_space<vmem>>, vector<4x1408xbf16>
    tpu.vector_store %arg7[%c96, %c0_67], %85 {strides = array<i32>} : memref<128x1408xbf16, #tpu.memory_space<vmem>>, vector<4x1408xbf16>,
    %c0_68 = arith.constant 0 : index
    %c685 = arith.constant 685 : index
    %87 = vector.load %arg6[%c0_68, %c685] : memref<4x2816xf32, #tpu.memory_space<vmem>>, vector<4x1408xf32>
    %88 = arith.truncf %87 : vector<4x1408xf32> to vector<4x1408xbf16>
    %c100 = arith.constant 100 : index
    %c0_69 = arith.constant 0 : index
    %89 = vector.load %arg7[%c100, %c0_69] : memref<128x1408xbf16, #tpu.memory_space<vmem>>, vector<4x1408xbf16>
    tpu.vector_store %arg7[%c100, %c0_69], %88 {strides = array<i32>} : memref<128x1408xbf16, #tpu.memory_space<vmem>>, vector<4x1408xbf16>,
    %c0_70 = arith.constant 0 : index
    %c686 = arith.constant 686 : index
    %90 = vector.load %arg6[%c0_70, %c686] : memref<4x2816xf32, #tpu.memory_space<vmem>>, vector<4x1408xf32>
    %91 = arith.truncf %90 : vector<4x1408xf32> to vector<4x1408xbf16>
    %c104 = arith.constant 104 : index
    %c0_71 = arith.constant 0 : index
    %92 = vector.load %arg7[%c104, %c0_71] : memref<128x1408xbf16, #tpu.memory_space<vmem>>, vector<4x1408xbf16>
    tpu.vector_store %arg7[%c104, %c0_71], %91 {strides = array<i32>} : memref<128x1408xbf16, #tpu.memory_space<vmem>>, vector<4x1408xbf16>,
    %c0_72 = arith.constant 0 : index
    %c0_73 = arith.constant 0 : index
    %93 = vector.load %arg2[%c0_72, %c0_73] : memref<8x128xbf16, #tpu.memory_space<vmem>>, vector<8x128xbf16>
    %c0_74 = arith.constant 0 : index
    %c0_75 = arith.constant 0 : index
    %94 = vector.load %arg7[%c0_74, %c0_75] : memref<128x1408xbf16, #tpu.memory_space<vmem>>, vector<128x1408xbf16>
    %cst_76 = arith.constant dense<0.000000e+00> : vector<8x1408xf32>
    %95 = tpu.matmul %93, %94, %cst_76 {dimension_numbers = #tpu.dot_dimension_numbers<[1], [0], [0], [1], [0, 0, 1, 1], [], []>} : vector<8x128xbf16>, vector<128x1408xbf16>, vector<8x1408xf32> -> vector<8x1408xf32>
    %cst_77 = arith.constant 0.000000e+00 : f32
    %96 = vector.broadcast %cst_77 : f32 to vector<8x1408xf32>
    %97 = arith.maximumf %95, %96 : vector<8x1408xf32>
    %c0_78 = arith.constant 0 : index
    %c4_79 = arith.constant 4 : index
    %c0_80 = arith.constant 0 : index
    %98 = vector.load %arg5[%c0_78, %c4_79, %c0_80] : memref<1x12x1408xf32, #tpu.memory_space<vmem>>, vector<1x8x1408xf32>
    %99 = vector.shape_cast %98 : vector<1x8x1408xf32> to vector<8x1408xf32>
    %100 = vector.shape_cast %97 : vector<8x1408xf32> to vector<1x8x1408xf32>
    tpu.vector_store %arg5[%c0_78, %c4_79, %c0_80], %100 {strides = array<i32>} : memref<1x12x1408xf32, #tpu.memory_space<vmem>>, vector<1x8x1408xf32>,
    return
  }
  func.func @transform_0(%arg0: i32, %arg1: i32) -> (i32, i32) {
    %c0_i32 = arith.constant 0 : i32
    %c0_i32_0 = arith.constant 0 : i32
    %c0_i32_1 = arith.constant 0 : i32
    return %c0_i32, %c0_i32_0 : i32, i32
  }
  func.func @transform_1(%arg0: i32, %arg1: i32) -> (i32, i32, i32) {
    %c0_i32 = arith.constant 0 : i32
    %c0_i32_0 = arith.constant 0 : i32
    return %arg0, %c0_i32, %arg1 : i32, i32, i32
  }
  func.func @transform_2(%arg0: i32, %arg1: i32) -> (i32, i32, i32) {
    %c1_i32 = arith.constant 1 : i32
    %0 = arith.addi %arg1, %c1_i32 : i32
    %c0_i32 = arith.constant 0 : i32
    %c0_i32_0 = arith.constant 0 : i32
    return %arg0, %c0_i32, %0 : i32, i32, i32
  }
  func.func @transform_3(%arg0: i32, %arg1: i32) -> (i32, i32, i32) {
    %c0_i32 = arith.constant 0 : i32
    %c0_i32_0 = arith.constant 0 : i32
    return %arg0, %c0_i32, %arg1 : i32, i32, i32
  }
}

</mosaic_0001>

<bundles_post_ra>
// kernel: make_dense_forward.1
= control target key start
LH: loop header
LB: loop body
LE: loop exit
PB: predicated region body
PF: predicated region fallthrough
CT: control target
= control target key end

     0   :  { %s5115_s12 = smov 0   ;;  %s5117_s13 = smov 0   ;;  %s6484_s0 = inlined_call_operand.vmem [shape: bf16[8,128], index: 0, kind: input, shape index: {}]   ;;  %s6485_s1 = inlined_call_operand.vmem [shape: f32[2,4,4224], index: 1, kind: input, shape index: {}, may-alias: {1,2}]   ;;  %s6486_s2 = inlined_call_operand.vmem [shape: f32[2,4,4224], index: 2, kind: input, shape index: {}, may-alias: {1,2}]   ;;  %s6487_s3 = inlined_call_operand.vmem [shape: f32[2,12,2816], index: 3, kind: output, shape index: {}]  }
   0x1   :  { %s5119_s14 = smov 0   ;;  %s5121_s15 = smov 0  }
   0x2   :  { %s5123_s16 = smov 0   ;;  %s5125_s17 = smov 0  }
   0x3   :  { %s5127_s18 = smov 0  }
   0x4 LB: > { %s22_s19 = sadd.s32 1, %s5056_s16  ;;  %s25_s20 = sadd.s32 1, %s5060_s17  ;;  %s5064_s18 = sphi %s5127_s18, %s13_s18   ;;  %s5060_s17 = sphi %s5125_s17, %s6663_s17   ;;  %s5056_s16 = sphi %s5123_s16, %s6662_s16   ;;  %s5052_s15 = sphi %s5121_s15, %s6661_s15   ;;  %s5048_s14 = sphi %s5119_s14, %s6660_s14   ;;  %s5044_s13 = sphi %s5117_s13, %s6659_s13   ;;  %s5040_s12 = sphi %s5115_s12, %s6658_s12  }
   0x5   : > { %p23_p0 = scmp.ge.s32.totalorder %s22_s19, 2  ;;  %s4333_s21 = sadd.s32 4294967295, %s5064_s18  }
   0x6   : > { %p123_p1 = scmp.ne.s32.totalorder %s5044_s13, %s5040_s12  ;;  %p124_p2 = scmp.eq.s32.totalorder %s4333_s21, 3 }
   0x7   : > { %s6665_s19 = smov (%p23_p0, %s22_s19), 0  ;;  %s6667_s20 = smov (!%p23_p0, %s25_s20), %s5060_s17 }
   0x8   : > { %s109_s22 = ssub.s32 %s5056_s16, %s6665_s19  ;;  %p27_p3 = scmp.ge.s32.totalorder %s6667_s20, 2 }
   0x9   : > { %p4337_p4 = scmp.ge.s32.totalorder %s5064_s18, 1  ;;  %p5161_p5 = por %p124_p2, %p123_p1 }
   0xa   : > { %p179_p6 = scmp.lt.s32.totalorder %s5064_s18, 5  ;;  %s6669_s20 = smov (%p27_p3, %s6667_s20), 0 }
   0xb   : > { %s108_s24 = ssub.s32 %s5060_s17, %s6669_s20  ;;  %s113_s26 = sadd.s32 1, %s5044_s13 }
   0xc   : > { %p180_p7 = pnand %p4337_p4, %p179_p6  ;;  %s110_s25 = sor.u32 %s109_s22, %s108_s24 }
   0xd   : > { %p111_p8 = scmp.eq.s32.totalorder %s110_s25, 0  ;;  %s5175_s28 = smul.u32 (!%p180_p7), 11, %s5048_s14 }
   0xe   : > { %183 = sbr.rel (%p180_p7) target bundleno = 688 (0x2b0), region = 32  ;;  %p217_p9 = scmp.lt.s32.totalorder (!%p180_p7), %s5052_s15, 1 }
   0xf   : > { %s5172_s27 = scalar_select %p111_p8, %s5044_s13, %s113_s26  }
  0x10   : > { %p219_p10 = scmp.lt.s32.totalorder (!%p180_p7), %s5175_s28, 32  ;;  %s6518_s10 = smov (!%p180_p7), 82  }
  0x11   : > { %s5068_s11 = smov (!%p180_p7), 84   ;;  %s6513_s21 = smov (!%p180_p7), 118  }
  0x12   : > { %s6509_s22 = smov (!%p180_p7), 101   ;;  %s6519_s24 = smov (!%p180_p7), 83  }
  0x13   : > { %s5179_s29 = scalar_select %p217_p9, %s5052_s15, 1  ;;  %v5066_v12 = vmov 0   ;;  %vm520_vm0 = vcmask 1043456   ;;  %vm3072_vm1 = vcmask 687104   ;;  %vm3294_vm2 = vcmask 670720  }
  0x14   : > { %s220_s4 = scalar_select %p219_p10, %s5175_s28, 32  ;;  %346 = vst [vmem:[#allocation3 + $0x268] sm:$0xff] %v5066_v12  ;;  %340 = vst [vmem:[#allocation3 + $0x23c] sm:$0xcc] %v5066_v12  ;;  %3894 = vmatprep.mubr.bf16.mxu0 %v5066_v12  ;;  %3935 = vmatprep.mubr.bf16.mxu1 %v5066_v12  ;;  %v4580_v17 = vcombine.high %v5066_v12, %v5066_v12  ;;  %v4579_v18 = vcombine.low %v5066_v12, %v5066_v12  ;;  %vm3186_vm3 = vcmask 678912   ;;  %vm2628_vm4 = vcmask 965632  }
  0x15   : > { %s4785_s30 = smul.u32 33, %s5179_s29  ;;  %341 = vst [vmem:[#allocation3 + $0x244] sm:$0xcc] %v5066_v12  ;;  %342 = vst [vmem:[#allocation3 + $0x24c] sm:$0xcc] %v5066_v12  ;;  %s226_s25 = sadd.s32 1, %s5048_s14 }
  0x16   : > { %343 = vst [vmem:[#allocation3 + $0x254] sm:$0xcc] %v5066_v12  ;;  %344 = vst [vmem:[#allocation3 + $0x25c] sm:$0xcc] %v5066_v12  ;;  %3862 = vmatprep.subr.bf16.mxu0 %v4580_v17  ;;  %3903 = vmatprep.subr.bf16.mxu1 %v4580_v17  ;;  %s227_s26 = smul.u32 11, %s226_s25  ;;  %s6512_s8 = smov 102  }
  0x17   : > { %s222_s5 = sadd.s32 %s4785_s30, %s220_s4  ;;  %345 = vst [vmem:[#allocation3 + $0x264] sm:$0xc] %v5066_v12  ;;  %351 = vst [vmem:[#allocation3 + $0x290] sm:$0xf] %v5066_v12  ;;  %3863 = vmatpush1.bf16.msra.mxu0 %v4579_v18  ;;  %3904 = vmatpush1.bf16.msra.mxu1 %v4579_v18  ;;  %s6508_s29 = smov 100   ;;  %vm2742_vm5 = vcmask 834560  }
  0x18   : > { %s4338_s6 = sshll.u32 %s222_s5, 2  ;;  %357 = vst [vmem:[#allocation3 + $0x2bc] sm:$0xf] %v5066_v12  ;;  %p230_p11 = scmp.lt.s32.totalorder %s227_s26, 32  ;;  %vm2850_vm6 = vcmask 826368   ;;  %vm2964_vm7 = vcmask 818176  }
  0x19   : > { %s224_s9 = scalar_lea.vmem %s6485_s1, %s4338_s6  ;;  %s6498_s25 = smov 120   ;;  %vm2184_vm8 = vcmask 187392   ;;  %vm6548_vm9 = vcmask 179200   ;;  %vm6547_vm10 = vcmask 982016   ;;  %vm6546_vm11 = vcmask 973824  }
  0x1a   : > { %v5189_v0 = vld [vmem:[%s224_s9 + $0x18] sm:$0xff]  ;;  %v244_v1 = vld [vmem:[%s224_s9 + $0x20] sm:$0xff]  ;;  %v5191_v2 = vld [vmem:[%s224_s9 + $0x10] sm:$0xff]  ;;  %s6671_s26 = smov (!%p230_p11, %s227_s26), 32  ;;  %s6492_s5 = smov 40   ;;  %vm6517_vm12 = vcmask 343040  }
  0x1b   : > { %249 = vst [vmem:[#allocation2 + $0x18] sm:$0xff] %v5189_v0  ;;  %250 = vst [vmem:[#allocation2 + $0x20] sm:$0xff] %v244_v1  ;;  %v245_v3 = vld [vmem:[%s224_s9 + $0x28] sm:$0xf]  ;;  %v5197_v5 = vld [vmem:[%s224_s9] sm:$0xff]  ;;  %s233_s4 = sadd.s32 %s4785_s30, %s6671_s26  ;;  %v2112_v25 = vcombine.high %v5191_v2, %v5191_v2  ;;  %s6511_s30 = smov 23   ;;  %v2113_v29 = vcombine.high %v5189_v0, %v5189_v0 }
  0x1c   : > { %248 = vst [vmem:[#allocation2 + $0x10] sm:$0xff] %v5191_v2  ;;  %v5195_v4 = vld [vmem:[%s224_s9 + $0x8] sm:$0xff]  ;;  %251 = vst [vmem:[#allocation2 + $0x28] sm:$0xf] %v245_v3  ;;  %s4339_s14 = sshll.u32 %s233_s4, 2  ;;  %s6510_s9 = smov 22   ;;  %v1223_v32 = vcombine.high %v5197_v5, %v5197_v5 }
  0x1d   : > { %247 = vst [vmem:[#allocation2 + $0x8] sm:$0xff] %v5195_v4  ;;  %246 = vst [vmem:[#allocation2] sm:$0xff] %v5197_v5  ;;  %s5232_s7 = scalar_lea.vmem %s6486_s2, %s4339_s14  ;;  %v2111_v23 = vcombine.high %v5195_v4, %v5195_v4  ;;  %v5262_v26 = vpack.c.bf16 %v2112_v25, %v5191_v2  ;;  %s6488_s26 = smov 119   ;;  %v4691_v30 = vpack.c.bf16 %v2113_v29, %v5189_v0  ;;  %vm6516_vm13 = vcmask 334848  }
  0x1e   : > { %v5235_v21 = vld [vmem:[%s5232_s7] sm:$0xff]  ;;  %v5244_v22 = vld [vmem:[%s5232_s7 + $0x8] sm:$0xff]  ;;  %s6490_s4 = smov 42   ;;  %s6496_s14 = smov 41   ;;  %v5311_v33 = vpack.c.bf16 %v1223_v32, %v5197_v5  ;;  %v5361_v51 = vld [vmem:[%s5232_s7 + $0x10] sm:$0xff]  ;;  %vm6514_vm14 = vcmask 326656  }
  0x1f   : > { %258 = vst [vmem:[#allocation2 + $0x2c] sm:$0xff] %v5235_v21  ;;  %259 = vst [vmem:[#allocation2 + $0x34] sm:$0xff] %v5244_v22  ;;  %v5254_v24 = vpack.c.bf16 %v2111_v23, %v5195_v4  ;;  %v5272_v28 = vrot.slane %v5262_v26, 6  ;;  %v2275_v31 = vrot.slane %v4691_v30, 6  ;;  %s6494_s6 = smov 24   ;;  %s5090_s7 = smov 127  }
  0x20   : > { %v5338_v34 = vrot.slane %v5311_v33, 6  ;;  %vm6515_vm15 = vcmask 195584  }
  0x21   : > { %v5265_v27 = vrot.slane %v5254_v24, 6 }
  0x22   : > { %v3210_v6 = vld [vmem:[#allocation2 + $0x1c] sm:$0xff] }
  0x23   : > { %v2987_v7 = vld [vmem:[#allocation2 + $0x14] sm:$0xff]  ;;  %v3222_v8 = vcombine.high %v3210_v6, %v3210_v6  ;;  %v2989_v13 = vld [vmem:[#allocation2 + $0x24] sm:$0xff] }
  0x24   : > { %v2999_v9 = vcombine.high %v2987_v7, %v2987_v7  ;;  %v3001_v14 = vcombine.high %v2989_v13, %v2989_v13  ;;  %v358_v53 = vld [vmem:[#allocation2] sm:$0xff] }
  0x25   : > { %v5201_v10 = vpack.c.bf16 %v3222_v8, %v3210_v6  ;;  %v369_v54 = vcombine.high %v358_v53, %v358_v53  ;;  %v359_v8 = vld [vmem:[#allocation2 + $0x8] sm:$0xff] }
  0x26   : > { %v5203_v11 = vpack.c.bf16 %v2999_v9, %v2987_v7  ;;  %v4739_v15 = vpack.c.bf16 %v3001_v14, %v2989_v13  ;;  %v370_v9 = vcombine.high %v359_v8, %v359_v8 }
  0x27   : > { %3277 = vrot.lane.b32.xlu1 %v5201_v10, %s6518_s10  ;;  %v3162_v19 = vrot.slane %v5201_v10, 6  ;;  %v4593_v59 = vpack.c.bf16 %v369_v54, %v358_v53  ;;  %v3003_v53 = vcombine.high %v5244_v22, %v5244_v22 }
  0x28   : > { %3053 = vrot.lane.b32.xlu0 %v5203_v11, %s5068_s11  ;;  %v3161_v16 = vrot.slane %v5203_v11, 6  ;;  %v3163_v20 = vrot.slane %v4739_v15, 6 }
  0x29   : > { %424 = vst [vmem:[#allocation3] sm:$0x33] %v4593_v59 }
  0x2b   : > { %2609 = vrot.lane.b32.xlu1 %v5203_v11, %s6513_s21 }
  0x2c   : > { %3055 = vrot.lane.b32.xlu0 %v5201_v10, %s5068_s11 }
  0x2f   : > { %2831 = vrot.lane.b32.xlu1 %v5203_v11, %s6509_s22 }
  0x30   : > { %3275 = vrot.lane.b32.xlu0 %v5203_v11, %s6518_s10 }
  0x33   : > { %3167 = vrot.lane.b32.xlu1 %v3161_v16, %s6519_s24 }
  0x34   : > { %3057 = vrot.lane.b32.xlu0 %v4739_v15, %s5068_s11 }
  0x37   : > { %3169 = vrot.lane.b32.xlu1 %v3162_v19, %s6519_s24 }
  0x38   : > { %3279 = vrot.lane.b32.xlu0 %v4739_v15, %s6518_s10 }
  0x3b   : > { %3171 = vrot.lane.b32.xlu1 %v3163_v20, %s6519_s24 }
  0x3c   : > { %2611 = vrot.lane.b32.xlu0 %v5201_v10, %s6513_s21 }
  0x3f   : > { %2723 = vrot.lane.b32.xlu1 %v3161_v16, %s6512_s8 }
  0x40   : > { %2725 = vrot.lane.b32.xlu0 %v3162_v19, %s6512_s8 }
  0x43   : > { %2945 = vrot.lane.b32.xlu1 %v3161_v16, %s6508_s29 }
  0x44   : > { %2833 = vrot.lane.b32.xlu0 %v5201_v10, %s6509_s22 }
  0x47   : > { %2613 = vrot.lane.b32.xlu1 %v4739_v15, %s6513_s21 }
  0x48   : > { %2947 = vrot.lane.b32.xlu0 %v3162_v19, %s6508_s29 }
  0x4b   : > { %2835 = vrot.lane.b32.xlu1 %v4739_v15, %s6509_s22 }
  0x4c   : > { %2727 = vrot.lane.b32.xlu0 %v3163_v20, %s6512_s8 }
  0x4f   : > { %2165 = vrot.lane.b32.xlu1 %v5254_v24, %s6511_s30 }
  0x50   : > { %2949 = vrot.lane.b32.xlu0 %v3163_v20, %s6508_s29 }
  0x53   : > { %2279 = vrot.lane.b32.xlu1 %v5265_v27, %s6510_s9 }
  0x54   : > { %2167 = vrot.lane.b32.xlu0 %v5262_v26, %s6511_s30 }
  0x57   : > { %2387 = vrot.lane.b32.xlu1 %v5203_v11, %s6498_s25 }
  0x58   : > { %2281 = vrot.lane.b32.xlu0 %v5272_v28, %s6510_s9 }
  0x5b   : > { %2501 = vrot.lane.b32.xlu1 %v3161_v16, %s6488_s26  ;;  %v4594_v16 = vpack.c.bf16 %v370_v9, %v359_v8 }
  0x5c   : > { %2389 = vrot.lane.b32.xlu0 %v5201_v10, %s6498_s25 }
  0x5d   : > { %425 = vst [vmem:[#allocation3 + $0x8] sm:$0x33] %v4594_v16 }
  0x5f   : > { %2169 = vrot.lane.b32.xlu1 %v4691_v30, %s6511_s30 }
  0x60   : > { %2503 = vrot.lane.b32.xlu0 %v3162_v19, %s6488_s26 }
  0x63   : > { %2391 = vrot.lane.b32.xlu1 %v4739_v15, %s6498_s25  ;;  %s5087_s25 = smov 108  }
  0x64   : > { %2283 = vrot.lane.b32.xlu0 %v2275_v31, %s6510_s9 }
  0x67   : > { %1721 = vrot.lane.b32.xlu1 %v5254_v24, %s6490_s4 }
  0x68   : > { %2505 = vrot.lane.b32.xlu0 %v3163_v20, %s6488_s26  ;;  %s6523_s26 = smov 90  }
  0x6b   : > { %1835 = vrot.lane.b32.xlu1 %v5265_v27, %s6496_s14 }
  0x6c   : > { %1723 = vrot.lane.b32.xlu0 %v5262_v26, %s6490_s4 }
  0x6f   : > { %1943 = vrot.lane.b32.xlu1 %v5254_v24, %s6492_s5 }
  0x70   : > { %1837 = vrot.lane.b32.xlu0 %v5272_v28, %s6496_s14 }
  0x73   : > { %2057 = vrot.lane.b32.xlu1 %v5265_v27, %s6494_s6 }
  0x74   : > { %1945 = vrot.lane.b32.xlu0 %v5262_v26, %s6492_s5 }
  0x77   : > { %1725 = vrot.lane.b32.xlu1 %v4691_v30, %s6490_s4  ;;  %s6522_s4 = smov 60  }
  0x78   : > { %2059 = vrot.lane.b32.xlu0 %v5272_v28, %s6494_s6 }
  0x7b   : > { %1947 = vrot.lane.b32.xlu1 %v4691_v30, %s6492_s5  ;;  %s6502_s5 = smov 59  }
  0x7c   : > { %1839 = vrot.lane.b32.xlu0 %v2275_v31, %s6496_s14  ;;  %s5086_s14 = smov 109  }
  0x7f   : > { %1277 = vrot.lane.b32.xlu1 %v5311_v33, %s6523_s26 }
  0x80   : > { %2061 = vrot.lane.b32.xlu0 %v2275_v31, %s6494_s6  ;;  %s6500_s6 = smov 58  }
  0x83   : > { %1391 = vrot.lane.b32.xlu1 %v5265_v27, %s6522_s4 }
  0x84   : > { %1279 = vrot.lane.b32.xlu0 %v5254_v24, %s6523_s26 }
  0x87   : > { %1499 = vrot.lane.b32.xlu1 %v5254_v24, %s6502_s5 }
  0x88   : > { %1393 = vrot.lane.b32.xlu0 %v5272_v28, %s6522_s4 }
  0x8b   : > { %1613 = vrot.lane.b32.xlu1 %v5265_v27, %s6500_s6 }
  0x8c   : > { %1501 = vrot.lane.b32.xlu0 %v5262_v26, %s6502_s5 }
  0x8f   : > { %1281 = vrot.lane.b32.xlu1 %v5262_v26, %s6523_s26 }
  0x90   : > { %1615 = vrot.lane.b32.xlu0 %v5272_v28, %s6500_s6 }
  0x93   : > { %1503 = vrot.lane.b32.xlu1 %v4691_v30, %s6502_s5  ;;  %s6504_s5 = smov 91  }
  0x94   : > { %1395 = vrot.lane.b32.xlu0 %v2275_v31, %s6522_s4 }
  0x97   : > { %833 = vrot.lane.b32.xlu1 %v5311_v33, %s5086_s14 }
  0x98   : > { %1617 = vrot.lane.b32.xlu0 %v2275_v31, %s6500_s6  ;;  %s6506_s6 = smov 92  }
  0x99   : > { %v3278_v35 = vpop.permute.xlu1 %3277 }
  0x9a   : > { %v3054_v36 = vpop.permute.xlu0 %3053  ;;  %v3288_v45 = vrot.slane %v3278_v35, 4 }
  0x9b   : > { %947 = vrot.lane.b32.xlu1 %v5338_v34, %s5087_s25  ;;  %v3065_v39 = vrot.slane %v3054_v36, 4 }
  0x9c   : > { %835 = vrot.lane.b32.xlu0 %v5254_v24, %s5086_s14 }
  0x9d   : > { %v2610_v38 = vpop.permute.xlu1 %2609 }
  0x9e   : > { %v3056_v37 = vpop.permute.xlu0 %3055  ;;  %v2621_v5 = vrot.slane %v2610_v38, 4 }
  0x9f   : > { %v3066_v40 = vrot.slane %v3056_v37, 4  ;;  %1055 = vrot.lane.b32.xlu1 %v5311_v33, %s6506_s6 }
  0xa0   : > { %949 = vrot.lane.b32.xlu0 %v5265_v27, %s5087_s25 }
  0xa1   : > { %v3071_v41 = vsel %vm520_vm0, %v3065_v39, %v3066_v40  ;;  %v5350_v44 = vpop.permute.xlu1 %2831 }
  0xa2   : > { %v3073_v42 = vsel %vm3072_vm1, %v3054_v36, %v3071_v41  ;;  %v3276_v43 = vpop.permute.xlu0 %3275  ;;  %v2843_v31 = vrot.slane %v5350_v44, 4 }
  0xa3   : > { %3089 = vst [vmem:[#allocation3 + $0x210] sm:$0x33] %v3073_v42  ;;  %v3287_v46 = vrot.slane %v3276_v43, 4  ;;  %1169 = vrot.lane.b32.xlu1 %v5338_v34, %s6504_s5 }
  0xa4   : > { %1057 = vrot.lane.b32.xlu0 %v5254_v24, %s6506_s6 }
  0xa5   : > { %v3293_v47 = vsel %vm520_vm0, %v3287_v46, %v3288_v45  ;;  %v3168_v50 = vpop.permute.xlu1 %3167 }
  0xa6   : > { %v3295_v48 = vsel %vm3294_vm2, %v3276_v43, %v3293_v47  ;;  %v5358_v49 = vpop.permute.xlu0 %3057  ;;  %v3179_v60 = vrot.slane %v3168_v50, 4 }
  0xa7   : > { %3311 = vst [vmem:[#allocation3 + $0x23c] sm:$0x33] %v3295_v48  ;;  %v3067_v52 = vrot.slane %v5358_v49, 4  ;;  %837 = vrot.lane.b32.xlu1 %v5262_v26, %s5086_s14 }
  0xa8   : > { %1171 = vrot.lane.b32.xlu0 %v5265_v27, %s6504_s5 }
  0xa9   : > { %v3074_v55 = vsel %vm520_vm0, %v3066_v40, %v3067_v52  ;;  %v3170_v58 = vpop.permute.xlu1 %3169 }
  0xaa   : > { %v3075_v56 = vsel %vm3072_vm1, %v3056_v37, %v3074_v55  ;;  %v5372_v57 = vpop.permute.xlu0 %3279  ;;  %v3180_v62 = vrot.slane %v3170_v58, 4 }
  0xab   : > { %3090 = vst [vmem:[#allocation3 + $0x218] sm:$0x33] %v3075_v56  ;;  %v3289_v61 = vrot.slane %v5372_v57, 4  ;;  %1059 = vrot.lane.b32.xlu1 %v5262_v26, %s6506_s6  ;;  %s6540_s6 = smov 110  }
  0xac   : > { %951 = vrot.lane.b32.xlu0 %v5272_v28, %s5087_s25  ;;  %v3185_v0 = vsel %vm520_vm0, %v3179_v60, %v3180_v62  ;;  %v5465_v60 = vpack.c.bf16 %v3003_v53, %v5244_v22 }
  0xad   : > { %v3296_v63 = vsel %vm520_vm0, %v3288_v45, %v3289_v61  ;;  %v3187_v2 = vsel %vm3186_vm3, %v3168_v50, %v3185_v0  ;;  %v5387_v4 = vpop.permute.xlu1 %3171 }
  0xae   : > { %v3297_v1 = vsel %vm3294_vm2, %v3278_v35, %v3296_v63  ;;  %v5385_v3 = vpop.permute.xlu0 %2611  ;;  %3203 = vst [vmem:[#allocation3 + $0x210] sm:$0xcc] %v3187_v2  ;;  %v3181_v7 = vrot.slane %v5387_v4, 4  ;;  %v5476_v22 = vrot.slane %v5465_v60, 6 }
  0xaf   : > { %3312 = vst [vmem:[#allocation3 + $0x244] sm:$0x33] %v3297_v1  ;;  %v2622_v6 = vrot.slane %v5385_v3, 4  ;;  %502 = vrot.lane.b32.xlu1 %v5338_v34, %s5090_s7 }
  0xb0   : > { %1173 = vrot.lane.b32.xlu0 %v5272_v28, %s6504_s5  ;;  %v3188_v11 = vsel %vm520_vm0, %v3180_v62, %v3181_v7  ;;  %s6531_s5 = smov 126  }
  0xb1   : > { %v2627_v10 = vsel %vm520_vm0, %v2621_v5, %v2622_v6  ;;  %v3189_v13 = vsel %vm3186_vm3, %v3170_v58, %v3188_v11  ;;  %v2724_v15 = vpop.permute.xlu1 %2723 }
  0xb2   : > { %v2629_v12 = vsel %vm2628_vm4, %v2610_v38, %v2627_v10  ;;  %v2726_v14 = vpop.permute.xlu0 %2725  ;;  %3204 = vst [vmem:[#allocation3 + $0x218] sm:$0xcc] %v3189_v13  ;;  %v2735_v18 = vrot.slane %v2724_v15, 4 }
  0xb3   : > { %2645 = vst [vmem:[#allocation3 + $0x1b8] sm:$0x33] %v2629_v12  ;;  %v2736_v17 = vrot.slane %v2726_v14, 4  ;;  %611 = vrot.lane.b32.xlu1 %v5311_v33, %s6531_s5  ;;  %v3002_v33 = vcombine.high %v5235_v21, %v5235_v21 }
  0xb4   : > { %504 = vrot.lane.b32.xlu0 %v5265_v27, %s5090_s7 }
  0xb5   : > { %v2741_v19 = vsel %vm520_vm0, %v2735_v18, %v2736_v17  ;;  %v2946_v25 = vpop.permute.xlu1 %2945  ;;  %v4879_v29 = vld [vmem:[#allocation3 + $0x214] ss:$44 sps:$4 sm:$0xff]   ;;  %v4881_v30 = vld [vmem:[#allocation3 + $0x210] ss:$44 sps:$4 sm:$0xff]   ;;  %v5425_v42 = vpack.c.bf16 %v3002_v33, %v5235_v21 }
  0xb6   : > { %v2743_v20 = vsel %vm2742_vm5, %v2724_v15, %v2741_v19  ;;  %v2834_v23 = vpop.permute.xlu0 %2833  ;;  %3864 = vmatprep.subr.bf16.mxu0 %v4879_v29  ;;  %v2102_v29 = vld [vmem:[#allocation2 + $0x20] sm:$0xff] }
  0xb7   : > { %2759 = vst [vmem:[#allocation3 + $0x1b8] sm:$0xcc] %v2743_v20  ;;  %v2844_v32 = vrot.slane %v2834_v23, 4  ;;  %725 = vrot.lane.b32.xlu1 %v5338_v34, %s6540_s6  ;;  %3865 = vmatpush1.bf16.msra.mxu0 %v4881_v30  ;;  %v5445_v50 = vrot.slane %v5425_v42, 6 }
  0xb8   : > { %613 = vrot.lane.b32.xlu0 %v5254_v24, %s6531_s5  ;;  %v2957_v24 = vrot.slane %v2946_v25, 4 }
  0xb9   : > { %v2849_v35 = vsel %vm520_vm0, %v2843_v31, %v2844_v32  ;;  %v5417_v38 = vpop.permute.xlu1 %2613  ;;  %v4882_v39 = vld [vmem:[#allocation3 + $0x21c] ss:$44 sps:$4 sm:$0xff]   ;;  %v4884_v40 = vld [vmem:[#allocation3 + $0x218] ss:$44 sps:$4 sm:$0xff]  }
  0xba   : > { %v2851_v36 = vsel %vm2850_vm6, %v5350_v44, %v2849_v35  ;;  %v2948_v37 = vpop.permute.xlu0 %2947  ;;  %v2623_v34 = vrot.slane %v5417_v38, 4  ;;  %3905 = vmatprep.subr.bf16.mxu1 %v4882_v39 }
  0xbb   : > { %2867 = vst [vmem:[#allocation3 + $0x1e4] sm:$0x33] %v2851_v36  ;;  %v2958_v41 = vrot.slane %v2948_v37, 4  ;;  %506 = vrot.lane.b32.xlu1 %v5272_v28, %s5090_s7  ;;  %3906 = vmatpush1.bf16.msra.mxu1 %v4884_v40 }
  0xbc   : > { %727 = vrot.lane.b32.xlu0 %v5265_v27, %s6540_s6  ;;  %v2630_v44 = vsel %vm520_vm0, %v2622_v6, %v2623_v34 }
  0xbd   : > { %v2963_v43 = vsel %vm520_vm0, %v2957_v24, %v2958_v41  ;;  %v2631_v46 = vsel %vm2628_vm4, %v5385_v3, %v2630_v44  ;;  %v5436_v27 = vpop.permute.xlu1 %2835 }
  0xbe   : > { %v2965_v45 = vsel %vm2964_vm7, %v2946_v25, %v2963_v43  ;;  %v5434_v47 = vpop.permute.xlu0 %2727  ;;  %2646 = vst [vmem:[#allocation3 + $0x1c0] sm:$0x33] %v2631_v46  ;;  %v2845_v48 = vrot.slane %v5436_v27, 4 }
  0xbf   : > { %2981 = vst [vmem:[#allocation3 + $0x1e4] sm:$0xcc] %v2965_v45  ;;  %v2737_v21 = vrot.slane %v5434_v47, 4  ;;  %729 = vrot.lane.b32.xlu1 %v5272_v28, %s6540_s6 }
  0xc0   : > { %615 = vrot.lane.b32.xlu0 %v5262_v26, %s6531_s5  ;;  %v2852_v55 = vsel %vm520_vm0, %v2844_v32, %v2845_v48 }
  0xc1   : > { %v2744_v54 = vsel %vm520_vm0, %v2736_v17, %v2737_v21  ;;  %v2853_v26 = vsel %vm2850_vm6, %v2834_v23, %v2852_v55  ;;  %v2166_v28 = vpop.permute.xlu1 %2165 }
  0xc2   : > { %v2745_v56 = vsel %vm2742_vm5, %v2726_v14, %v2744_v54  ;;  %v5457_v58 = vpop.permute.xlu0 %2949  ;;  %2868 = vst [vmem:[#allocation3 + $0x1ec] sm:$0x33] %v2853_v26  ;;  %v2177_v5 = vrot.slane %v2166_v28, 4 }
  0xc3   : > { %2760 = vst [vmem:[#allocation3 + $0x1c0] sm:$0xcc] %v2745_v56  ;;  %v2959_v59 = vrot.slane %v5457_v58, 4  ;;  %3173 = vrot.lane.b32.xlu1 %v5445_v50, %s6519_s24  ;;  %v2103_v56 = vld [vmem:[#allocation2 + $0x28] sm:$0xff] }
  0xc4   : > { %3059 = vrot.lane.b32.xlu0 %v5425_v42, %s5068_s11 }
  0xc5   : > { %v2966_v62 = vsel %vm520_vm0, %v2958_v41, %v2959_v59  ;;  %v2280_v1 = vpop.permute.xlu1 %2279 }
  0xc6   : > { %v2967_v63 = vsel %vm2964_vm7, %v2948_v37, %v2966_v62  ;;  %v2168_v0 = vpop.permute.xlu0 %2167  ;;  %v4887_v2 = vld [vmem:[#allocation3 + $0x1bc] ss:$44 sps:$4 sm:$0xff]   ;;  %v4889_v3 = vld [vmem:[#allocation3 + $0x1b8] ss:$44 sps:$4 sm:$0xff]   ;;  %v2291_v12 = vrot.slane %v2280_v1, 4  ;;  %v2114_v37 = vcombine.high %v2102_v29, %v2102_v29 }
  0xc7   : > { %2982 = vst [vmem:[#allocation3 + $0x1ec] sm:$0xcc] %v2967_v63  ;;  %v2178_v6 = vrot.slane %v2168_v0, 4  ;;  %3061 = vrot.lane.b32.xlu1 %v5465_v60, %s5068_s11  ;;  %3866 = vmatprep.subr.bf16.mxu0 %v4887_v2  ;;  %v2115_v2 = vcombine.high %v2103_v56, %v2103_v56 }
  0xc8   : > { %3281 = vrot.lane.b32.xlu0 %v5425_v42, %s6518_s10  ;;  %3867 = vmatpush1.bf16.msra.mxu0 %v4889_v3  ;;  %v5515_v53 = vpack.c.bf16 %v2114_v37, %v2102_v29 }
  0xc9   : > { %v2183_v8 = vsel %vm520_vm0, %v2177_v5, %v2178_v6  ;;  %v2388_v11 = vpop.permute.xlu1 %2387 }
  0xca   : > { %v2185_v9 = vsel %vm2184_vm8, %v2166_v28, %v2183_v8  ;;  %v2282_v10 = vpop.permute.xlu0 %2281  ;;  %v2399_v20 = vrot.slane %v2388_v11, 4 }
  0xcb   : > { %2201 = vst [vmem:[#allocation3 + $0x160] sm:$0x33] %v2185_v9  ;;  %v2292_v13 = vrot.slane %v2282_v10, 4  ;;  %3283 = vrot.lane.b32.xlu1 %v5465_v60, %s6518_s10  ;;  %s6561_s10 = smov 59  }
  0xcc   : > { %3175 = vrot.lane.b32.xlu0 %v5476_v22, %s6519_s24  ;;  %s6562_s24 = smov 58  }
  0xcd   : > { %v2297_v14 = vsel %vm520_vm0, %v2291_v12, %v2292_v13  ;;  %v2502_v17 = vpop.permute.xlu1 %2501 }
  0xce   : > { %v2299_v15 = vsel %vm6548_vm9, %v2280_v1, %v2297_v14  ;;  %v2390_v16 = vpop.permute.xlu0 %2389  ;;  %v4890_v18 = vld [vmem:[#allocation3 + $0x1c4] ss:$44 sps:$4 sm:$0xff]   ;;  %v4892_v19 = vld [vmem:[#allocation3 + $0x1c0] ss:$44 sps:$4 sm:$0xff]   ;;  %v2513_v33 = vrot.slane %v2502_v17, 4  ;;  %v5533_v1 = vrot.slane %v5515_v53, 6 }
  0xcf   : > { %2315 = vst [vmem:[#allocation3 + $0x160] sm:$0xcc] %v2299_v15  ;;  %v2400_v23 = vrot.slane %v2390_v16, 4  ;;  %2729 = vrot.lane.b32.xlu1 %v5445_v50, %s6512_s8  ;;  %3907 = vmatprep.subr.bf16.mxu1 %v4890_v18 }
  0xd0   : > { %2615 = vrot.lane.b32.xlu0 %v5425_v42, %s6513_s21  ;;  %3908 = vmatpush1.bf16.msra.mxu1 %v4892_v19 }
  0xd1   : > { %v2405_v25 = vsel %vm520_vm0, %v2399_v20, %v2400_v23  ;;  %v5492_v32 = vpop.permute.xlu1 %2169 }
  0xd2   : > { %v2407_v30 = vsel %vm6547_vm10, %v2388_v11, %v2405_v25  ;;  %v2504_v31 = vpop.permute.xlu0 %2503  ;;  %v2179_v36 = vrot.slane %v5492_v32, 4 }
  0xd3   : > { %2423 = vst [vmem:[#allocation3 + $0x18c] sm:$0x33] %v2407_v30  ;;  %v2514_v35 = vrot.slane %v2504_v31, 4  ;;  %2951 = vrot.lane.b32.xlu1 %v5445_v50, %s6508_s29 }
  0xd4   : > { %2837 = vrot.lane.b32.xlu0 %v5425_v42, %s6509_s22  ;;  %v2186_v40 = vsel %vm520_vm0, %v2178_v6, %v2179_v36 }
  0xd5   : > { %v2519_v39 = vsel %vm520_vm0, %v2513_v33, %v2514_v35  ;;  %v2187_v41 = vsel %vm2184_vm8, %v2168_v0, %v2186_v40  ;;  %v5507_v44 = vpop.permute.xlu1 %2391 }
  0xd6   : > { %v2521_v24 = vsel %vm6546_vm11, %v2502_v17, %v2519_v39  ;;  %v5505_v43 = vpop.permute.xlu0 %2283  ;;  %2202 = vst [vmem:[#allocation3 + $0x168] sm:$0x33] %v2187_v41  ;;  %v2401_v46 = vrot.slane %v5507_v44, 4 }
  0xd7   : > { %2537 = vst [vmem:[#allocation3 + $0x18c] sm:$0xcc] %v2521_v24  ;;  %v2293_v45 = vrot.slane %v5505_v43, 4  ;;  %2731 = vrot.lane.b32.xlu1 %v5476_v22, %s6512_s8  ;;  %s6559_s8 = smov 40  }
  0xd8   : > { %2617 = vrot.lane.b32.xlu0 %v5465_v60, %s6513_s21  ;;  %v2408_v55 = vsel %vm520_vm0, %v2400_v23, %v2401_v46  ;;  %s6560_s21 = smov 24  }
  0xd9   : > { %v2300_v54 = vsel %vm520_vm0, %v2292_v13, %v2293_v45  ;;  %v2409_v28 = vsel %vm6547_vm10, %v2390_v16, %v2408_v55  ;;  %v1722_v63 = vpop.permute.xlu1 %1721  ;;  %v5543_v13 = vpack.c.bf16 %v2115_v2, %v2103_v56 }
  0xda   : > { %v2301_v26 = vsel %vm6548_vm9, %v2282_v10, %v2300_v54  ;;  %v5525_v62 = vpop.permute.xlu0 %2505  ;;  %2424 = vst [vmem:[#allocation3 + $0x194] sm:$0x33] %v2409_v28  ;;  %v1733_v11 = vrot.slane %v1722_v63, 4 }
  0xdb   : > { %2316 = vst [vmem:[#allocation3 + $0x168] sm:$0xcc] %v2301_v26  ;;  %v2515_v0 = vrot.slane %v5525_v62, 4  ;;  %2953 = vrot.lane.b32.xlu1 %v5476_v22, %s6508_s29  ;;  %s6555_s29 = smov 120   ;;  %v5552_v20 = vrot.slane %v5543_v13, 6 }
  0xdc   : > { %2839 = vrot.lane.b32.xlu0 %v5465_v60, %s6509_s22  ;;  %s6556_s22 = smov 119  }
  0xdd   : > { %v2522_v3 = vsel %vm520_vm0, %v2514_v35, %v2515_v0  ;;  %v1836_v8 = vpop.permute.xlu1 %1835 }
  0xde   : > { %v2523_v5 = vsel %vm6546_vm11, %v2504_v31, %v2522_v3  ;;  %v1724_v6 = vpop.permute.xlu0 %1723  ;;  %v4894_v9 = vld [vmem:[#allocation3 + $0x164] ss:$44 sps:$4 sm:$0xff]   ;;  %v4896_v10 = vld [vmem:[#allocation3 + $0x160] ss:$44 sps:$4 sm:$0xff]   ;;  %v1847_v18 = vrot.slane %v1836_v8, 4 }
  0xdf   : > { %2538 = vst [vmem:[#allocation3 + $0x194] sm:$0xcc] %v2523_v5  ;;  %v1734_v12 = vrot.slane %v1724_v6, 4  ;;  %2285 = vrot.lane.b32.xlu1 %v5533_v1, %s6510_s9  ;;  %3868 = vmatprep.subr.bf16.mxu0 %v4894_v9 }
  0xe0   : > { %2171 = vrot.lane.b32.xlu0 %v5515_v53, %s6511_s30  ;;  %3869 = vmatpush1.bf16.msra.mxu0 %v4896_v10 }
  0xe1   : > { %v1739_v14 = vsel %vm520_vm0, %v1733_v11, %v1734_v12  ;;  %v1944_v17 = vpop.permute.xlu1 %1943 }
  0xe2   : > { %v1741_v15 = vsel %vm6517_vm12, %v1722_v63, %v1739_v14  ;;  %v1838_v16 = vpop.permute.xlu0 %1837  ;;  %v1955_v35 = vrot.slane %v1944_v17, 4  ;;  %v1214_v14 = vld [vmem:[#allocation2 + $0x18] sm:$0xff] }
  0xe3   : > { %1757 = vst [vmem:[#allocation3 + $0x108] sm:$0x33] %v1741_v15  ;;  %v1848_v19 = vrot.slane %v1838_v16, 4  ;;  %2507 = vrot.lane.b32.xlu1 %v5445_v50, %s6556_s22 }
  0xe4   : > { %2393 = vrot.lane.b32.xlu0 %v5425_v42, %s6555_s29 }
  0xe5   : > { %v1853_v23 = vsel %vm520_vm0, %v1847_v18, %v1848_v19  ;;  %v2058_v30 = vpop.permute.xlu1 %2057 }
  0xe6   : > { %v1855_v25 = vsel %vm6516_vm13, %v1836_v8, %v1853_v23  ;;  %v1946_v29 = vpop.permute.xlu0 %1945  ;;  %v4898_v31 = vld [vmem:[#allocation3 + $0x16c] ss:$44 sps:$4 sm:$0xff]   ;;  %v4900_v33 = vld [vmem:[#allocation3 + $0x168] ss:$44 sps:$4 sm:$0xff]   ;;  %v2069_v24 = vrot.slane %v2058_v30, 4 }
  0xe7   : > { %1871 = vst [vmem:[#allocation3 + $0x108] sm:$0xcc] %v1855_v25  ;;  %v1956_v37 = vrot.slane %v1946_v29, 4  ;;  %2287 = vrot.lane.b32.xlu1 %v5552_v20, %s6510_s9  ;;  %3909 = vmatprep.subr.bf16.mxu1 %v4898_v31  ;;  %s6557_s9 = smov 42  }
  0xe8   : > { %2173 = vrot.lane.b32.xlu0 %v5543_v13, %s6511_s30  ;;  %3910 = vmatpush1.bf16.msra.mxu1 %v4900_v33  ;;  %s6558_s30 = smov 41  }
  0xe9   : > { %v1961_v42 = vsel %vm520_vm0, %v1955_v35, %v1956_v37  ;;  %v5562_v40 = vpop.permute.xlu1 %1725 }
  0xea   : > { %v1963_v50 = vsel %vm6514_vm14, %v1944_v17, %v1961_v42  ;;  %v2060_v39 = vpop.permute.xlu0 %2059  ;;  %v1735_v54 = vrot.slane %v5562_v40, 4 }
  0xeb   : > { %1979 = vst [vmem:[#allocation3 + $0x134] sm:$0x33] %v1963_v50  ;;  %v2070_v41 = vrot.slane %v2060_v39, 4  ;;  %2509 = vrot.lane.b32.xlu1 %v5476_v22, %s6556_s22 }
  0xec   : > { %2395 = vrot.lane.b32.xlu0 %v5465_v60, %s6555_s29  ;;  %v1742_v56 = vsel %vm520_vm0, %v1734_v12, %v1735_v54 }
  0xed   : > { %v2075_v55 = vsel %vm520_vm0, %v2069_v24, %v2070_v41  ;;  %v1743_v28 = vsel %vm6517_vm12, %v1724_v6, %v1742_v56  ;;  %v5577_v2 = vpop.permute.xlu1 %1947  ;;  %vm6521_vm12 = vcmask 474112  }
  0xee   : > { %v2077_v26 = vsel %vm6515_vm15, %v2058_v30, %v2075_v55  ;;  %v5575_v63 = vpop.permute.xlu0 %1839  ;;  %1758 = vst [vmem:[#allocation3 + $0x110] sm:$0x33] %v1743_v28  ;;  %v1957_v22 = vrot.slane %v5577_v2, 4 }
  0xef   : > { %2093 = vst [vmem:[#allocation3 + $0x134] sm:$0xcc] %v2077_v26  ;;  %v1849_v60 = vrot.slane %v5575_v63, 4  ;;  %1841 = vrot.lane.b32.xlu1 %v5533_v1, %s6558_s30 }
  0xf0   : > { %1727 = vrot.lane.b32.xlu0 %v5515_v53, %s6557_s9  ;;  %v1964_v5 = vsel %vm520_vm0, %v1956_v37, %v1957_v22 }
  0xf1   : > { %v1856_v3 = vsel %vm520_vm0, %v1848_v19, %v1849_v60  ;;  %v1965_v8 = vsel %vm6514_vm14, %v1946_v29, %v1964_v5  ;;  %v1278_v10 = vpop.permute.xlu1 %1277  ;;  %vm6526_vm14 = vcmask 736256   ;;  %v1226_v29 = vcombine.high %v1214_v14, %v1214_v14 }
  0xf2   : > { %v1857_v6 = vsel %vm6516_vm13, %v1838_v16, %v1856_v3  ;;  %v5593_v9 = vpop.permute.xlu0 %2061  ;;  %1980 = vst [vmem:[#allocation3 + $0x13c] sm:$0x33] %v1965_v8  ;;  %v1289_v23 = vrot.slane %v1278_v10, 4  ;;  %vm6520_vm13 = vcmask 482304  }
  0xf3   : > { %1872 = vst [vmem:[#allocation3 + $0x110] sm:$0xcc] %v1857_v6  ;;  %v6538_v11 = vrot.slane %v5593_v9, 4  ;;  %2063 = vrot.lane.b32.xlu1 %v5533_v1, %s6560_s21  ;;  %v5614_v50 = vpack.c.bf16 %v1226_v29, %v1214_v14 }
  0xf4   : > { %1949 = vrot.lane.b32.xlu0 %v5515_v53, %s6559_s8 }
  0xf5   : > { %v2078_v12 = vsel %vm520_vm0, %v2070_v41, %v6538_v11  ;;  %v1392_v17 = vpop.permute.xlu1 %1391 }
  0xf6   : > { %v2079_v15 = vsel %vm6515_vm15, %v2060_v39, %v2078_v12  ;;  %v1280_v16 = vpop.permute.xlu0 %1279  ;;  %v4901_v18 = vld [vmem:[#allocation3 + $0x10c] ss:$44 sps:$4 sm:$0xff]   ;;  %v4903_v19 = vld [vmem:[#allocation3 + $0x108] ss:$44 sps:$4 sm:$0xff]   ;;  %v1403_v37 = vrot.slane %v1392_v17, 4  ;;  %vm6524_vm15 = vcmask 490496  }
  0xf7   : > { %2094 = vst [vmem:[#allocation3 + $0x13c] sm:$0xcc] %v2079_v15  ;;  %v1290_v25 = vrot.slane %v1280_v16, 4  ;;  %1843 = vrot.lane.b32.xlu1 %v5552_v20, %s6558_s30  ;;  %3870 = vmatprep.subr.bf16.mxu0 %v4901_v18 }
  0xf8   : > { %1729 = vrot.lane.b32.xlu0 %v5543_v13, %s6557_s9  ;;  %3871 = vmatpush1.bf16.msra.mxu0 %v4903_v19 }
  0xf9   : > { %v1295_v30 = vsel %vm520_vm0, %v1289_v23, %v1290_v25  ;;  %v1500_v35 = vpop.permute.xlu1 %1499 }
  0xfa   : > { %v1297_v31 = vsel %vm6526_vm14, %v1278_v10, %v1295_v30  ;;  %v1394_v33 = vpop.permute.xlu0 %1393  ;;  %v1511_v28 = vrot.slane %v1500_v35, 4 }
  0xfb   : > { %1313 = vst [vmem:[#allocation3 + $0xb0] sm:$0x33] %v1297_v31  ;;  %v1404_v42 = vrot.slane %v1394_v33, 4  ;;  %2065 = vrot.lane.b32.xlu1 %v5552_v20, %s6560_s21 }
  0xfc   : > { %1951 = vrot.lane.b32.xlu0 %v5543_v13, %s6559_s8 }
  0xfd   : > { %v1409_v39 = vsel %vm520_vm0, %v1403_v37, %v1404_v42  ;;  %v1614_v55 = vpop.permute.xlu1 %1613 }
  0xfe   : > { %v1411_v24 = vsel %vm6524_vm15, %v1392_v17, %v1409_v39  ;;  %v1502_v41 = vpop.permute.xlu0 %1501  ;;  %v4905_v56 = vld [vmem:[#allocation3 + $0x114] ss:$44 sps:$4 sm:$0xff]   ;;  %v4907_v26 = vld [vmem:[#allocation3 + $0x110] ss:$44 sps:$4 sm:$0xff]   ;;  %v1625_v12 = vrot.slane %v1614_v55, 4 }
  0xff   : > { %1427 = vst [vmem:[#allocation3 + $0xb0] sm:$0xcc] %v1411_v24  ;;  %v1512_v3 = vrot.slane %v1502_v41, 4  ;;  %1397 = vrot.lane.b32.xlu1 %v5533_v1, %s6522_s4  ;;  %3911 = vmatprep.subr.bf16.mxu1 %v4905_v56 }
 0x100   : > { %1283 = vrot.lane.b32.xlu0 %v5614_v50, %s6523_s26  ;;  %3912 = vmatpush1.bf16.msra.mxu1 %v4907_v26 }
 0x101   : > { %v1517_v5 = vsel %vm520_vm0, %v1511_v28, %v1512_v3  ;;  %v5624_v10 = vpop.permute.xlu1 %1281 }
 0x102   : > { %v1519_v6 = vsel %vm6520_vm13, %v1500_v35, %v1517_v5  ;;  %v1616_v8 = vpop.permute.xlu0 %1615  ;;  %v6537_v15 = vrot.slane %v5624_v10, 4 }
 0x103   : > { %1535 = vst [vmem:[#allocation3 + $0xdc] sm:$0x33] %v1519_v6  ;;  %v1626_v14 = vrot.slane %v1616_v8, 4  ;;  %1619 = vrot.lane.b32.xlu1 %v5533_v1, %s6562_s24 }
 0x104   : > { %1505 = vrot.lane.b32.xlu0 %v5515_v53, %s6561_s10  ;;  %v1298_v18 = vsel %vm520_vm0, %v1290_v25, %v6537_v15 }
 0x105   : > { %v1631_v17 = vsel %vm520_vm0, %v1625_v12, %v1626_v14  ;;  %v1299_v23 = vsel %vm6526_vm14, %v1280_v16, %v1298_v18  ;;  %v5639_v30 = vpop.permute.xlu1 %1503  ;;  %vm6530_vm14 = vcmask 744448  }
 0x106   : > { %v1633_v19 = vsel %vm6521_vm12, %v1614_v55, %v1631_v17  ;;  %v5637_v29 = vpop.permute.xlu0 %1395  ;;  %1314 = vst [vmem:[#allocation3 + $0xb8] sm:$0x33] %v1299_v23  ;;  %v6527_v35 = vrot.slane %v5639_v30, 4 }
 0x107   : > { %1649 = vst [vmem:[#allocation3 + $0xdc] sm:$0xcc] %v1633_v19  ;;  %v6528_v31 = vrot.slane %v5637_v29, 4  ;;  %1399 = vrot.lane.b32.xlu1 %v5552_v20, %s6522_s4  ;;  %v5675_v19 = vld [vmem:[#allocation2 + $0x10] sm:$0xff]  ;;  %s6563_s4 = smov 92  }
 0x108   : > { %1285 = vrot.lane.b32.xlu0 %v5515_v53, %s6523_s26  ;;  %v1520_v25 = vsel %vm520_vm0, %v1512_v3, %v6527_v35  ;;  %s6564_s26 = smov 91   ;;  %v5683_v23 = vcombine.high %v5675_v19, %v5675_v19 }
 0x109   : > { %v1412_v16 = vsel %vm520_vm0, %v1404_v42, %v6528_v31  ;;  %v1521_v39 = vsel %vm6520_vm13, %v1502_v41, %v1520_v25  ;;  %v834_v55 = vpop.permute.xlu1 %833  ;;  %v5663_v42 = vrot.slane %v5614_v50, 6  ;;  %vm852_vm13 = vcmask 891904  }
 0x10a   : > { %v1413_v37 = vsel %vm6524_vm15, %v1394_v33, %v1412_v16  ;;  %v5655_v24 = vpop.permute.xlu0 %1617  ;;  %1536 = vst [vmem:[#allocation3 + $0xe4] sm:$0x33] %v1521_v39  ;;  %v845_v6 = vrot.slane %v834_v55, 4  ;;  %vm6529_vm15 = vcmask 752640  }
 0x10b   : > { %1428 = vst [vmem:[#allocation3 + $0xb8] sm:$0xcc] %v1413_v37  ;;  %v6525_v56 = vrot.slane %v5655_v24, 4  ;;  %1621 = vrot.lane.b32.xlu1 %v5552_v20, %s6562_s24 }
 0x10c   : > { %1507 = vrot.lane.b32.xlu0 %v5543_v13, %s6561_s10 }
 0x10d   : > { %v1634_v33 = vsel %vm520_vm0, %v1626_v14, %v6525_v56  ;;  %v948_v28 = vpop.permute.xlu1 %947 }
 0x10e   : > { %v1635_v41 = vsel %vm6521_vm12, %v1616_v8, %v1634_v33  ;;  %v836_v26 = vpop.permute.xlu0 %835  ;;  %v4908_v3 = vld [vmem:[#allocation3 + $0xb4] ss:$44 sps:$4 sm:$0xff]   ;;  %v4910_v5 = vld [vmem:[#allocation3 + $0xb0] ss:$44 sps:$4 sm:$0xff]   ;;  %v959_v17 = vrot.slane %v948_v28, 4  ;;  %vm6532_vm12 = vcmask 883712  }
 0x10f   : > { %1650 = vst [vmem:[#allocation3 + $0xe4] sm:$0xcc] %v1635_v41  ;;  %v846_v13 = vrot.slane %v836_v26, 4  ;;  %953 = vrot.lane.b32.xlu1 %v5663_v42, %s5087_s25  ;;  %3872 = vmatprep.subr.bf16.mxu0 %v4908_v3  ;;  %v4595_v41 = vpack.c.bf16 %v5683_v23, %v5675_v19 }
 0x110   : > { %839 = vrot.lane.b32.xlu0 %v5614_v50, %s5086_s14  ;;  %3873 = vmatpush1.bf16.msra.mxu0 %v4910_v5 }
 0x111   : > { %v851_v20 = vsel %vm520_vm0, %v845_v6, %v846_v13  ;;  %v1056_v14 = vpop.permute.xlu1 %1055  ;;  %v5689_v6 = vld [vmem:[#allocation2 + $0x18] sm:$0xff]  ;;  %426 = vst [vmem:[#allocation3 + $0x10] sm:$0x33] %v4595_v41 }
 0x112   : > { %v853_v12 = vsel %vm852_vm13, %v834_v55, %v851_v20  ;;  %v950_v8 = vpop.permute.xlu0 %949  ;;  %v1067_v3 = vrot.slane %v1056_v14, 4 }
 0x113   : > { %869 = vst [vmem:[#allocation3 + $0x58] sm:$0x33] %v853_v12  ;;  %v960_v18 = vrot.slane %v950_v8, 4  ;;  %1175 = vrot.lane.b32.xlu1 %v5663_v42, %s6564_s26 }
 0x114   : > { %1061 = vrot.lane.b32.xlu0 %v5614_v50, %s6563_s4 }
 0x115   : > { %v965_v16 = vsel %vm520_vm0, %v959_v17, %v960_v18  ;;  %v1170_v39 = vpop.permute.xlu1 %1169 }
 0x116   : > { %v967_v25 = vsel %vm6532_vm12, %v948_v28, %v965_v16  ;;  %v1058_v37 = vpop.permute.xlu0 %1057  ;;  %v4911_v55 = vld [vmem:[#allocation3 + $0xbc] ss:$44 sps:$4 sm:$0xff]   ;;  %v4913_v33 = vld [vmem:[#allocation3 + $0xb8] ss:$44 sps:$4 sm:$0xff]   ;;  %v5697_v28 = vcombine.high %v5689_v6, %v5689_v6  ;;  %v1181_v56 = vrot.slane %v1170_v39, 4 }
 0x117   : > { %983 = vst [vmem:[#allocation3 + $0x58] sm:$0xcc] %v967_v25  ;;  %v1068_v5 = vrot.slane %v1058_v37, 4  ;;  %955 = vrot.lane.b32.xlu1 %v5533_v1, %s5087_s25  ;;  %3913 = vmatprep.subr.bf16.mxu1 %v4911_v55 }
 0x118   : > { %841 = vrot.lane.b32.xlu0 %v5515_v53, %s5086_s14  ;;  %3914 = vmatpush1.bf16.msra.mxu1 %v4913_v33  ;;  %v4596_v25 = vpack.c.bf16 %v5697_v28, %v5689_v6 }
 0x119   : > { %v1073_v20 = vsel %vm520_vm0, %v1067_v3, %v1068_v5  ;;  %v5701_v16 = vpop.permute.xlu1 %837 }
 0x11a   : > { %v1075_v12 = vsel %vm6529_vm15, %v1056_v14, %v1073_v20  ;;  %v1172_v17 = vpop.permute.xlu0 %1171  ;;  %v6536_v35 = vrot.slane %v5701_v16, 4  ;;  %427 = vst [vmem:[#allocation3 + $0x18] sm:$0x33] %v4596_v25 }
 0x11b   : > { %1091 = vst [vmem:[#allocation3 + $0x84] sm:$0x33] %v1075_v12  ;;  %v1182_v41 = vrot.slane %v1172_v17, 4  ;;  %1177 = vrot.lane.b32.xlu1 %v5533_v1, %s6564_s26 }
 0x11c   : > { %1063 = vrot.lane.b32.xlu0 %v5515_v53, %s6563_s4  ;;  %v854_v55 = vsel %vm520_vm0, %v846_v13, %v6536_v35 }
 0x11d   : > { %v1187_v14 = vsel %vm520_vm0, %v1181_v56, %v1182_v41  ;;  %v855_v3 = vsel %vm852_vm13, %v836_v26, %v854_v55  ;;  %v5718_v12 = vpop.permute.xlu1 %1059  ;;  %v3004_v56 = vcombine.high %v5361_v51, %v5361_v51 }
 0x11e   : > { %v1189_v33 = vsel %vm6530_vm14, %v1170_v39, %v1187_v14  ;;  %v5716_v20 = vpop.permute.xlu0 %951  ;;  %870 = vst [vmem:[#allocation3 + $0x60] sm:$0x33] %v855_v3  ;;  %v6534_v25 = vrot.slane %v5718_v12, 4 }
 0x11f   : > { %1205 = vst [vmem:[#allocation3 + $0x84] sm:$0xcc] %v1189_v33  ;;  %v6535_v31 = vrot.slane %v5716_v20, 4  ;;  %617 = vrot.lane.b32.xlu1 %v5614_v50, %s6531_s5 }
 0x120   : > { %508 = vrot.lane.b32.xlu0 %v5663_v42, %s5090_s7  ;;  %v1076_v13 = vsel %vm520_vm0, %v1068_v5, %v6534_v25 }
 0x121   : > { %v968_v26 = vsel %vm520_vm0, %v960_v18, %v6535_v31  ;;  %v1077_v14 = vsel %vm6529_vm15, %v1058_v37, %v1076_v13  ;;  %v503_v33 = vpop.permute.xlu1 %502  ;;  %v5744_v18 = vpack.c.bf16 %v3004_v56, %v5361_v51  ;;  %vm522_vm15 = vcmask 1039360  }
 0x122   : > { %v969_v39 = vsel %vm6532_vm12, %v950_v8, %v968_v26  ;;  %v5736_v55 = vpop.permute.xlu0 %1173  ;;  %1092 = vst [vmem:[#allocation3 + $0x8c] sm:$0x33] %v1077_v14  ;;  %vm744_vm12 = vcmask 900096  }
 0x123   : > { %984 = vst [vmem:[#allocation3 + $0x60] sm:$0xcc] %v969_v39  ;;  %v6533_v50 = vrot.slane %v5736_v55, 4  ;;  %510 = vrot.lane.b32.xlu1 %v5533_v1, %s5090_s7  ;;  %v514_v39 = vrot.slane %v503_v33, 4  ;;  %v5755_v51 = vrot.slane %v5744_v18, 6 }
 0x124   : > { %731 = vrot.lane.b32.xlu0 %v5663_v42, %s6540_s6 }
 0x125   : > { %v1190_v8 = vsel %vm520_vm0, %v1182_v41, %v6533_v50  ;;  %v612_v3 = vpop.permute.xlu1 %611 }
 0x126   : > { %v1191_v37 = vsel %vm6530_vm14, %v1172_v17, %v1190_v8  ;;  %v505_v5 = vpop.permute.xlu0 %504  ;;  %v4914_v26 = vld [vmem:[#allocation3 + $0x5c] ss:$44 sps:$4 sm:$0xff]   ;;  %v4916_v13 = vld [vmem:[#allocation3 + $0x58] ss:$44 sps:$4 sm:$0xff]   ;;  %v623_v8 = vrot.slane %v612_v3, 4  ;;  %vm630_vm14 = vcmask 1031168  }
 0x127   : > { %1206 = vst [vmem:[#allocation3 + $0x8c] sm:$0xcc] %v1191_v37  ;;  %v515_v42 = vrot.slane %v505_v5, 4  ;;  %733 = vrot.lane.b32.xlu1 %v5533_v1, %s6540_s6  ;;  %3874 = vmatprep.subr.bf16.mxu0 %v4914_v26  ;;  %v2104_v1 = vld [vmem:[#allocation2 + $0x30] sm:$0xff] }
 0x128   : > { %619 = vrot.lane.b32.xlu0 %v5515_v53, %s6531_s5  ;;  %3875 = vmatpush1.bf16.msra.mxu0 %v4916_v13  ;;  %s6565_s5 = smov 83  }
 0x129   : > { %v521_v41 = vsel %vm520_vm0, %v514_v39, %v515_v42  ;;  %v726_v14 = vpop.permute.xlu1 %725 }
 0x12a   : > { %v523_v17 = vsel %vm522_vm15, %v503_v33, %v521_v41  ;;  %v614_v56 = vpop.permute.xlu0 %613 }
 0x12b   : > { %539 = vst [vmem:[#allocation3] sm:$0xcc] %v523_v17  ;;  %v624_v37 = vrot.slane %v614_v56, 4  ;;  %3177 = vrot.lane.b32.xlu1 %v5755_v51, %s6565_s5  ;;  %v737_v17 = vrot.slane %v726_v14, 4  ;;  %s6567_s5 = smov 118  }
 0x12c   : > { %3063 = vrot.lane.b32.xlu0 %v5744_v18, %s5068_s11  ;;  %s6566_s11 = smov 82  }
 0x12d   : > { %v629_v53 = vsel %vm520_vm0, %v623_v8, %v624_v37  ;;  %v5765_v33 = vpop.permute.xlu1 %506  ;;  %v2116_v8 = vcombine.high %v2104_v1, %v2104_v1 }
 0x12e   : > { %v631_v26 = vsel %vm630_vm14, %v612_v3, %v629_v53  ;;  %v728_v39 = vpop.permute.xlu0 %727  ;;  %v4918_v13 = vld [vmem:[#allocation3 + $0x64] ss:$44 sps:$4 sm:$0xff]   ;;  %v4920_v41 = vld [vmem:[#allocation3 + $0x60] ss:$44 sps:$4 sm:$0xff]   ;;  %v6542_v25 = vrot.slane %v5765_v33, 4 }
 0x12f   : > { %647 = vst [vmem:[#allocation3 + $0x2c] sm:$0x33] %v631_v26  ;;  %v738_v50 = vrot.slane %v728_v39, 4  ;;  %2619 = vrot.lane.b32.xlu1 %v5744_v18, %s6567_s5  ;;  %3915 = vmatprep.subr.bf16.mxu1 %v4918_v13  ;;  %s6569_s5 = smov 101  }
 0x130   : > { %3285 = vrot.lane.b32.xlu0 %v5744_v18, %s6566_s11  ;;  %v524_v53 = vsel %vm520_vm0, %v515_v42, %v6542_v25  ;;  %3916 = vmatpush1.bf16.msra.mxu1 %v4920_v41  ;;  %s6568_s11 = smov 102   ;;  %v5788_v42 = vpack.c.bf16 %v2116_v8, %v2104_v1 }
 0x131   : > { %v743_v3 = vsel %vm520_vm0, %v737_v17, %v738_v50  ;;  %v525_v31 = vsel %vm522_vm15, %v505_v5, %v524_v53  ;;  %v5780_v15 = vpop.permute.xlu1 %729 }
 0x132   : > { %v745_v26 = vsel %vm744_vm12, %v726_v14, %v743_v3  ;;  %v5778_v35 = vpop.permute.xlu0 %615  ;;  %540 = vst [vmem:[#allocation3 + $0x8] sm:$0xcc] %v525_v31  ;;  %v6539_v17 = vrot.slane %v5780_v15, 4 }
 0x133   : > { %761 = vst [vmem:[#allocation3 + $0x2c] sm:$0xcc] %v745_v26  ;;  %v6541_v11 = vrot.slane %v5778_v35, 4  ;;  %2841 = vrot.lane.b32.xlu1 %v5744_v18, %s6569_s5  ;;  %s6571_s5 = smov 23  }
 0x134   : > { %2733 = vrot.lane.b32.xlu0 %v5755_v51, %s6568_s11  ;;  %v746_v31 = vsel %vm520_vm0, %v738_v50, %v6539_v17  ;;  %s6570_s11 = smov 100   ;;  %v5818_v17 = vld [vmem:[#allocation3 + $0x268] sm:$0xff] }
 0x135   : > { %v632_v5 = vsel %vm520_vm0, %v624_v37, %v6541_v11  ;;  %v747_v13 = vsel %vm744_vm12, %v728_v39, %v746_v31  ;;  %v3174_v3 = vpop.permute.xlu1 %3173  ;;  %v5803_v37 = vrot.slane %v5788_v42, 6 }
 0x136   : > { %v633_v14 = vsel %vm630_vm14, %v614_v56, %v632_v5  ;;  %v3060_v41 = vpop.permute.xlu0 %3059  ;;  %762 = vst [vmem:[#allocation3 + $0x34] sm:$0xcc] %v747_v13  ;;  %v3182_v26 = vrot.slane %v3174_v3, 4 }
 0x137   : > { %648 = vst [vmem:[#allocation3 + $0x34] sm:$0x33] %v633_v14  ;;  %v3068_v53 = vrot.slane %v3060_v41, 4  ;;  %2175 = vrot.lane.b32.xlu1 %v5788_v42, %s6571_s5 }
 0x138   : > { %2955 = vrot.lane.b32.xlu0 %v5755_v51, %s6570_s11  ;;  %v3190_v56 = vsel %vm520_vm0, %v3181_v7, %v3182_v26  ;;  %v5822_v7 = vcombine.high %v5818_v17, %v5818_v17  ;;  %s6572_s11 = smov 22  }
 0x139   : > { %v3076_v50 = vsel %vm520_vm0, %v3067_v52, %v3068_v53  ;;  %v3191_v39 = vsel %vm3186_vm3, %v5387_v4, %v3190_v56  ;;  %v5815_v5 = vpop.permute.xlu1 %3061  ;;  %v1216_v56 = vld [vmem:[#allocation2 + $0x28] sm:$0xff] }
 0x13a   : > { %v3077_v1 = vsel %vm3072_vm1, %v5358_v49, %v3076_v50  ;;  %v3282_v8 = vpop.permute.xlu0 %3281  ;;  %v4923_v31 = vld [vmem:[#allocation3 + $0x4] ss:$44 sps:$4 sm:$0xff]   ;;  %v4925_v14 = vld [vmem:[#allocation3] ss:$44 sps:$4 sm:$0xff]   ;;  %3205 = vst [vmem:[#allocation3 + $0x220] sm:$0xcc] %v3191_v39 }
 0x13b   : > { %3091 = vst [vmem:[#allocation3 + $0x220] sm:$0x33] %v3077_v1  ;;  %v3290_v13 = vrot.slane %v3282_v8, 4  ;;  %v6543_v52 = vrot.slane %v5815_v5, 4  ;;  %2397 = vrot.lane.b32.xlu1 %v5744_v18, %s6555_s29  ;;  %3876 = vmatprep.subr.bf16.mxu0 %v4923_v31  ;;  %v5837_v50 = vld [vmem:[%s6484_s0] sm:$0xf] }
 0x13c   : > { %2289 = vrot.lane.b32.xlu0 %v5803_v37, %s6572_s11  ;;  %3877 = vmatpush1.bf16.msra.mxu0 %v4925_v14 }
 0x13d   : > { %v3298_v49 = vsel %vm520_vm0, %v3289_v61, %v3290_v13  ;;  %v3078_v4 = vsel %vm520_vm0, %v3068_v53, %v6543_v52  ;;  %v5844_v11 = vpop.permute.xlu1 %3283  ;;  %v5848_v53 = vcombine.low %v5818_v17, %v5818_v17  ;;  %3944 = vmatprep.subr.bf16.mxu0 %v5822_v7 }
 0x13e   : > { %v3299_v1 = vsel %vm3294_vm2, %v5372_v57, %v3298_v49  ;;  %v3079_v18 = vsel %vm3072_vm1, %v3060_v41, %v3078_v4  ;;  %v5842_v39 = vpop.permute.xlu0 %3175  ;;  %v4927_v61 = vld [vmem:[#allocation3 + $0xc] ss:$44 sps:$4 sm:$0xff]   ;;  %v4929_v25 = vld [vmem:[#allocation3 + $0x8] ss:$44 sps:$4 sm:$0xff]   ;;  %v6544_v52 = vrot.slane %v5844_v11, 4  ;;  %v1228_v57 = vcombine.high %v1216_v56, %v1216_v56 }
 0x13f   : > { %3313 = vst [vmem:[#allocation3 + $0x24c] sm:$0x33] %v3299_v1  ;;  %3092 = vst [vmem:[#allocation3 + $0x228] sm:$0x33] %v3079_v18  ;;  %v6545_v31 = vrot.slane %v5842_v39, 4  ;;  %1731 = vrot.lane.b32.xlu1 %v5788_v42, %s6557_s9  ;;  %3917 = vmatprep.subr.bf16.mxu1 %v4927_v61 }
 0x140   : > { %2511 = vrot.lane.b32.xlu0 %v5755_v51, %s6556_s22  ;;  %v3300_v14 = vsel %vm520_vm0, %v3290_v13, %v6544_v52  ;;  %3895 = vmatmul.mubr.bf16.vlgmr.msra.gmra.mxu0 %v5837_v50  ;;  %s6573_s22 = smov 90  }
 0x141   : > { %v3192_v41 = vsel %vm520_vm0, %v3182_v26, %v6545_v31  ;;  %v3301_v4 = vsel %vm3294_vm2, %v3282_v8, %v3300_v14  ;;  %3918 = vmatpush1.bf16.msra.mxu1 %v4929_v25  ;;  %v2730_v1 = vpop.permute.xlu1 %2729  ;;  %3945 = vmatpush1.bf16.msra.mxu0 %v5848_v53 }
 0x142   : > { %v3193_v49 = vsel %vm3186_vm3, %v3174_v3, %v3192_v41  ;;  %v2616_v51 = vpop.permute.xlu0 %2615  ;;  %3314 = vst [vmem:[#allocation3 + $0x254] sm:$0x33] %v3301_v4  ;;  %v2738_v26 = vrot.slane %v2730_v1, 4  ;;  %3985 = vmatprep.subr.bf16.mxu1 %v5822_v7  ;;  %3976 = vmatprep.mubr.bf16.mxu0 %v5818_v17  ;;  %v5873_v3 = vpack.c.bf16 %v1228_v57, %v1216_v56 }
 0x143   : > { %3206 = vst [vmem:[#allocation3 + $0x228] sm:$0xcc] %v3193_v49  ;;  %v2624_v18 = vrot.slane %v2616_v51, 4  ;;  %1953 = vrot.lane.b32.xlu1 %v5788_v42, %s6559_s8 }
 0x144   : > { %1845 = vrot.lane.b32.xlu0 %v5803_v37, %s6558_s30  ;;  %v2746_v8 = vsel %vm520_vm0, %v2737_v21, %v2738_v26  ;;  %3936 = vmatmul.mubr.bf16.vlgmr.msra.gmra.mxu1 %v5837_v50 }
 0x145   : > { %v2632_v25 = vsel %vm520_vm0, %v2623_v34, %v2624_v18  ;;  %v2747_v61 = vsel %vm2742_vm5, %v5434_v47, %v2746_v8  ;;  %v2952_v14 = vpop.permute.xlu1 %2951  ;;  %3986 = vmatpush1.bf16.msra.mxu1 %v5848_v53  ;;  %4017 = vmatprep.mubr.bf16.mxu1 %v5818_v17 }
 0x146   : > { %v2633_v13 = vsel %vm2628_vm4, %v5417_v38, %v2632_v25  ;;  %v2838_v41 = vpop.permute.xlu0 %2837  ;;  %v4931_v56 = vld [vmem:[#allocation3 + $0x220] ss:$44 sps:$4 sm:$0xff]   ;;  %v4933_v57 = vld [vmem:[#allocation3 + $0x224] ss:$44 sps:$4 sm:$0xff]   ;;  %2761 = vst [vmem:[#allocation3 + $0x1c8] sm:$0xcc] %v2747_v61 }
 0x147   : > { %2647 = vst [vmem:[#allocation3 + $0x1c8] sm:$0x33] %v2633_v13  ;;  %v2846_v34 = vrot.slane %v2838_v41, 4  ;;  %v2960_v21 = vrot.slane %v2952_v14, 4  ;;  %1287 = vrot.lane.b32.xlu1 %v5873_v3, %s6573_s22  ;;  %3946 = vmatprep.subr.bf16.mxu0 %v4933_v57  ;;  %v5908_v57 = vld [vmem:[#allocation2 + $0x20] sm:$0xff] }
 0x148   : > { %2067 = vrot.lane.b32.xlu0 %v5803_v37, %s6560_s21  ;;  %3947 = vmatpush1.bf16.msra.mxu0 %v4931_v56  ;;  %s6574_s21 = smov 60  }
 0x149   : > { %v2854_v38 = vsel %vm520_vm0, %v2845_v48, %v2846_v34  ;;  %v2968_v47 = vsel %vm520_vm0, %v2959_v59, %v2960_v21  ;;  %v5904_v8 = vpop.permute.xlu1 %2731 }
 0x14a   : > { %v2855_v49 = vsel %vm2850_vm6, %v5436_v27, %v2854_v38  ;;  %v2969_v4 = vsel %vm2964_vm7, %v5457_v58, %v2968_v47  ;;  %v5902_v25 = vpop.permute.xlu0 %2617  ;;  %v4934_v13 = vld [vmem:[#allocation3 + $0x228] ss:$44 sps:$4 sm:$0xff]   ;;  %v2739_v61 = vrot.slane %v5904_v8, 4  ;;  %v4936_v59 = vld [vmem:[#allocation3 + $0x22c] ss:$44 sps:$4 sm:$0xff]   ;;  %v5916_v58 = vcombine.high %v5908_v57, %v5908_v57 }
 0x14b   : > { %2869 = vst [vmem:[#allocation3 + $0x1f4] sm:$0x33] %v2855_v49  ;;  %2983 = vst [vmem:[#allocation3 + $0x1f4] sm:$0xcc] %v2969_v4  ;;  %v2625_v48 = vrot.slane %v5902_v25, 4  ;;  %1509 = vrot.lane.b32.xlu1 %v5788_v42, %s6561_s10  ;;  %3987 = vmatprep.subr.bf16.mxu1 %v4936_v59  ;;  %s6575_s10 = smov 126  }
 0x14c   : > { %1401 = vrot.lane.b32.xlu0 %v5803_v37, %s6574_s21  ;;  %v363_v27 = vld [vmem:[#allocation2 + $0x28] sm:$0xf]  ;;  %v2748_v38 = vsel %vm520_vm0, %v2738_v26, %v2739_v61  ;;  %3988 = vmatpush1.bf16.msra.mxu1 %v4934_v13  ;;  %v4597_v31 = vpack.c.bf16 %v5916_v58, %v5908_v57 }
 0x14d   : > { %v2634_v56 = vsel %vm520_vm0, %v2624_v18, %v2625_v48  ;;  %v4598_v47 = vpack.c.bf16 %v363_v27, %v363_v27  ;;  %v2749_v4 = vsel %vm2742_vm5, %v2730_v1, %v2748_v38  ;;  %v5928_v52 = vpop.permute.xlu1 %2953 }
 0x14e   : > { %v2635_v49 = vsel %vm2628_vm4, %v2616_v51, %v2634_v56  ;;  %v5926_v42 = vpop.permute.xlu0 %2839  ;;  %2762 = vst [vmem:[#allocation3 + $0x1d0] sm:$0xcc] %v2749_v4  ;;  %v2961_v26 = vrot.slane %v5928_v52, 4  ;;  %v946_v51 = vrot.slane %v5873_v3, 6  ;;  %428 = vst [vmem:[#allocation3 + $0x20] sm:$0x33] %v4597_v31 }
 0x14f   : > { %2648 = vst [vmem:[#allocation3 + $0x1d0] sm:$0x33] %v2635_v49  ;;  %v2847_v18 = vrot.slane %v5926_v42, 4  ;;  %429 = vst [vmem:[#allocation3 + $0x28] sm:$0x3] %v4598_v47  ;;  %843 = vrot.lane.b32.xlu1 %v5873_v3, %s5086_s14 }
 0x150   : > { %1623 = vrot.lane.b32.xlu0 %v5803_v37, %s6562_s24  ;;  %v2970_v13 = vsel %vm520_vm0, %v2960_v21, %v2961_v26  ;;  %s6576_s24 = smov 110  }
 0x151   : > { %v2856_v1 = vsel %vm520_vm0, %v2846_v34, %v2847_v18  ;;  %v2971_v27 = vsel %vm2964_vm7, %v2952_v14, %v2970_v13  ;;  %v2286_v37 = vpop.permute.xlu1 %2285 }
 0x152   : > { %v2857_v59 = vsel %vm2850_vm6, %v2838_v41, %v2856_v1  ;;  %v2172_v56 = vpop.permute.xlu0 %2171  ;;  %v4937_v38 = vld [vmem:[#allocation3 + $0x1c8] ss:$44 sps:$4 sm:$0xff]   ;;  %v4939_v47 = vld [vmem:[#allocation3 + $0x1cc] ss:$44 sps:$4 sm:$0xff]   ;;  %2984 = vst [vmem:[#allocation3 + $0x1fc] sm:$0xcc] %v2971_v27 }
 0x153   : > { %2870 = vst [vmem:[#allocation3 + $0x1fc] sm:$0x33] %v2857_v59  ;;  %v2180_v49 = vrot.slane %v2172_v56, 4  ;;  %v2294_v31 = vrot.slane %v2286_v37, 4  ;;  %1065 = vrot.lane.b32.xlu1 %v5873_v3, %s6563_s4  ;;  %3948 = vmatprep.subr.bf16.mxu0 %v4939_v47 }
 0x154   : > { %957 = vrot.lane.b32.xlu0 %v946_v51, %s5087_s25  ;;  %3949 = vmatpush1.bf16.msra.mxu0 %v4937_v38 }
 0x155   : > { %v2188_v34 = vsel %vm520_vm0, %v2179_v36, %v2180_v49  ;;  %v2302_v41 = vsel %vm520_vm0, %v2293_v45, %v2294_v31  ;;  %v2508_v1 = vpop.permute.xlu1 %2507 }
 0x156   : > { %v2189_v14 = vsel %vm2184_vm8, %v5492_v32, %v2188_v34  ;;  %v2303_v21 = vsel %vm6548_vm9, %v5505_v43, %v2302_v41  ;;  %v2394_v4 = vpop.permute.xlu0 %2393  ;;  %v2516_v59 = vrot.slane %v2508_v1, 4 }
 0x157   : > { %2203 = vst [vmem:[#allocation3 + $0x170] sm:$0x33] %v2189_v14  ;;  %2317 = vst [vmem:[#allocation3 + $0x170] sm:$0xcc] %v2303_v21  ;;  %v2402_v13 = vrot.slane %v2394_v4, 4  ;;  %512 = vrot.lane.b32.xlu1 %v946_v51, %s5090_s7 }
 0x158   : > { %1179 = vrot.lane.b32.xlu0 %v946_v51, %s6564_s26  ;;  %v2524_v32 = vsel %vm520_vm0, %v2515_v0, %v2516_v59 }
 0x159   : > { %v2410_v36 = vsel %vm520_vm0, %v2401_v46, %v2402_v13  ;;  %v2525_v45 = vsel %vm6546_vm11, %v5525_v62, %v2524_v32  ;;  %v5974_v38 = vpop.permute.xlu1 %2287 }
 0x15a   : > { %v2411_v43 = vsel %vm6547_vm10, %v5507_v44, %v2410_v36  ;;  %v5972_v27 = vpop.permute.xlu0 %2173  ;;  %v4940_v47 = vld [vmem:[#allocation3 + $0x1d0] ss:$44 sps:$4 sm:$0xff]   ;;  %v4942_v34 = vld [vmem:[#allocation3 + $0x1d4] ss:$44 sps:$4 sm:$0xff]   ;;  %2539 = vst [vmem:[#allocation3 + $0x19c] sm:$0xcc] %v2525_v45 }
 0x15b   : > { %2425 = vst [vmem:[#allocation3 + $0x19c] sm:$0x33] %v2411_v43  ;;  %v2181_v46 = vrot.slane %v5972_v27, 4  ;;  %v2295_v41 = vrot.slane %v5974_v38, 4  ;;  %735 = vrot.lane.b32.xlu1 %v946_v51, %s6576_s24  ;;  %3989 = vmatprep.subr.bf16.mxu1 %v4942_v34 }
 0x15c   : > { %621 = vrot.lane.b32.xlu0 %v5873_v3, %s6575_s10  ;;  %3990 = vmatpush1.bf16.msra.mxu1 %v4940_v47 }
 0x15d   : > { %v2190_v44 = vsel %vm520_vm0, %v2180_v49, %v2181_v46  ;;  %v2304_v62 = vsel %vm520_vm0, %v2294_v31, %v2295_v41  ;;  %v5991_v36 = vpop.permute.xlu1 %2509  ;;  %v264_v49 = vld [vmem:[#allocation2 + $0x8] sm:$0xff] }
 0x15e   : > { %v2191_v0 = vsel %vm2184_vm8, %v2172_v56, %v2190_v44  ;;  %v2305_v14 = vsel %vm6548_vm9, %v2286_v37, %v2304_v62  ;;  %v5989_v21 = vpop.permute.xlu0 %2395  ;;  %v2517_v51 = vrot.slane %v5991_v36, 4  ;;  %v276_v37 = vcombine.high %v264_v49, %v264_v49 }
 0x15f   : > { %2204 = vst [vmem:[#allocation3 + $0x178] sm:$0x33] %v2191_v0  ;;  %2318 = vst [vmem:[#allocation3 + $0x178] sm:$0xcc] %v2305_v14  ;;  %v2403_v3 = vrot.slane %v5989_v21, 4  ;;  %vm6604_vm9 = vcmask 744448  }
 0x160   : > { %v2526_v56 = vsel %vm520_vm0, %v2516_v59, %v2517_v51  ;;  %282 = vrot.lane.b32.xlu0 %v264_v49, %s6558_s30  ;;  %284 = vrot.lane.b32.xlu1 %v276_v37, %s6558_s30 }
 0x161   : > { %v2412_v31 = vsel %vm520_vm0, %v2402_v13, %v2403_v3  ;;  %v2527_v43 = vsel %vm6546_vm11, %v2508_v1, %v2526_v56  ;;  %v1842_v47 = vpop.permute.xlu1 %1841  ;;  %vm6577_vm11 = vcmask 343040  }
 0x162   : > { %v2413_v32 = vsel %vm6547_vm10, %v2394_v4, %v2412_v31  ;;  %v1728_v45 = vpop.permute.xlu0 %1727  ;;  %v4943_v34 = vld [vmem:[#allocation3 + $0x170] ss:$44 sps:$4 sm:$0xff]   ;;  %v4945_v44 = vld [vmem:[#allocation3 + $0x174] ss:$44 sps:$4 sm:$0xff]   ;;  %2540 = vst [vmem:[#allocation3 + $0x1a4] sm:$0xcc] %v2527_v43 }
 0x163   : > { %2426 = vst [vmem:[#allocation3 + $0x1a4] sm:$0x33] %v2413_v32  ;;  %v1736_v62 = vrot.slane %v1728_v45, 4  ;;  %v1850_v0 = vrot.slane %v1842_v47, 4  ;;  %3950 = vmatprep.subr.bf16.mxu0 %v4945_v44  ;;  %vm6578_vm10 = vcmask 334848  }
 0x164   : > { %3951 = vmatpush1.bf16.msra.mxu0 %v4943_v34  ;;  %286 = vrot.lane.b32.xlu0 %v5675_v19, %s6558_s30  ;;  %v6579_v19 = vrot.slane %v5593_v9, 4 }
 0x165   : > { %v1744_v13 = vsel %vm520_vm0, %v1735_v54, %v1736_v62  ;;  %v1858_v4 = vsel %vm520_vm0, %v1849_v60, %v1850_v0  ;;  %v2064_v49 = vpop.permute.xlu1 %2063  ;;  %288 = vrot.lane.b32.xlu1 %v5683_v23, %s6558_s30 }
 0x166   : > { %v1745_v1 = vsel %vm6577_vm11, %v5562_v40, %v1744_v13  ;;  %v1859_v59 = vsel %vm6578_vm10, %v5575_v63, %v1858_v4  ;;  %v1950_v14 = vpop.permute.xlu0 %1949  ;;  %v2072_v54 = vrot.slane %v2064_v49, 4  ;;  %vm6580_vm10 = vcmask 326656   ;;  %v268_v4 = vld [vmem:[#allocation2 + $0x28] sm:$0xff] }
 0x167   : > { %1759 = vst [vmem:[#allocation3 + $0x118] sm:$0x33] %v1745_v1  ;;  %1873 = vst [vmem:[#allocation3 + $0x118] sm:$0xcc] %v1859_v59  ;;  %v1958_v31 = vrot.slane %v1950_v14, 4  ;;  %vm6581_vm11 = vcmask 195584  }
 0x168   : > { %v2080_v40 = vsel %vm520_vm0, %v6579_v19, %v2072_v54  ;;  %290 = vrot.lane.b32.xlu0 %v5689_v6, %s6558_s30 }
 0x169   : > { %v1966_v60 = vsel %vm520_vm0, %v1957_v22, %v1958_v31  ;;  %v2081_v56 = vsel %vm6581_vm11, %v5593_v9, %v2080_v40  ;;  %v6033_v23 = vpop.permute.xlu1 %1843  ;;  %292 = vrot.lane.b32.xlu1 %v5697_v28, %s6558_s30  ;;  %vm6583_vm11 = vcmask 334848  }
 0x16a   : > { %v1967_v63 = vsel %vm6580_vm10, %v5577_v2, %v1966_v60  ;;  %v6031_v37 = vpop.permute.xlu0 %1729  ;;  %v4946_v32 = vld [vmem:[#allocation3 + $0x178] ss:$44 sps:$4 sm:$0xff]   ;;  %v4948_v43 = vld [vmem:[#allocation3 + $0x17c] ss:$44 sps:$4 sm:$0xff]   ;;  %2095 = vst [vmem:[#allocation3 + $0x144] sm:$0xcc] %v2081_v56 }
 0x16b   : > { %1981 = vst [vmem:[#allocation3 + $0x144] sm:$0x33] %v1967_v63  ;;  %v1737_v22 = vrot.slane %v6031_v37, 4  ;;  %v1851_v34 = vrot.slane %v6033_v23, 4  ;;  %3991 = vmatprep.subr.bf16.mxu1 %v4948_v43  ;;  %vm6582_vm10 = vcmask 343040  }
 0x16c   : > { %3992 = vmatpush1.bf16.msra.mxu1 %v4946_v32  ;;  %294 = vrot.lane.b32.xlu0 %v5908_v57, %s6558_s30 }
 0x16d   : > { %v1746_v2 = vsel %vm520_vm0, %v1736_v62, %v1737_v22  ;;  %v1860_v9 = vsel %vm520_vm0, %v1850_v0, %v1851_v34  ;;  %v6051_v28 = vpop.permute.xlu1 %2065  ;;  %v280_v0 = vcombine.high %v268_v4, %v268_v4  ;;  %296 = vrot.lane.b32.xlu1 %v5916_v58, %s6558_s30 }
 0x16e   : > { %v1747_v6 = vsel %vm6582_vm10, %v1728_v45, %v1746_v2  ;;  %v1861_v44 = vsel %vm6583_vm11, %v1842_v47, %v1860_v9  ;;  %v6049_v13 = vpop.permute.xlu0 %1951  ;;  %v2073_v1 = vrot.slane %v6051_v28, 4  ;;  %v269_v47 = vld [vmem:[#allocation2 + $0x30] sm:$0xff]  ;;  %vm6584_vm10 = vcmask 326656  }
 0x16f   : > { %1760 = vst [vmem:[#allocation3 + $0x120] sm:$0x33] %v1747_v6  ;;  %1874 = vst [vmem:[#allocation3 + $0x120] sm:$0xcc] %v1861_v44  ;;  %v1959_v62 = vrot.slane %v6049_v13, 4  ;;  %vm6585_vm11 = vcmask 195584  }
 0x170   : > { %v2082_v45 = vsel %vm520_vm0, %v2072_v54, %v2073_v1  ;;  %298 = vrot.lane.b32.xlu0 %v268_v4, %s6558_s30  ;;  %v6586_v54 = vrot.slane %v5624_v10, 4 }
 0x171   : > { %v1968_v57 = vsel %vm520_vm0, %v1958_v31, %v1959_v62  ;;  %v2083_v60 = vsel %vm6585_vm11, %v2064_v49, %v2082_v45  ;;  %v1398_v40 = vpop.permute.xlu1 %1397  ;;  %v281_v31 = vcombine.high %v269_v47, %v269_v47  ;;  %300 = vrot.lane.b32.xlu1 %v280_v0, %s6558_s30  ;;  %vm6589_vm11 = vcmask 490496  }
 0x172   : > { %v1969_v59 = vsel %vm6584_vm10, %v1950_v14, %v1968_v57  ;;  %v1284_v19 = vpop.permute.xlu0 %1283  ;;  %v4949_v63 = vld [vmem:[#allocation3 + $0x118] ss:$44 sps:$4 sm:$0xff]   ;;  %v4951_v56 = vld [vmem:[#allocation3 + $0x11c] ss:$44 sps:$4 sm:$0xff]   ;;  %2096 = vst [vmem:[#allocation3 + $0x14c] sm:$0xcc] %v2083_v60 }
 0x173   : > { %1982 = vst [vmem:[#allocation3 + $0x14c] sm:$0x33] %v1969_v59  ;;  %v1292_v58 = vrot.slane %v1284_v19, 4  ;;  %v1406_v32 = vrot.slane %v1398_v40, 4  ;;  %3952 = vmatprep.subr.bf16.mxu0 %v4951_v56  ;;  %v6587_v14 = vrot.slane %v5637_v29, 4  ;;  %vm6588_vm10 = vcmask 736256  }
 0x174   : > { %3953 = vmatpush1.bf16.msra.mxu0 %v4949_v63  ;;  %302 = vrot.lane.b32.xlu0 %v269_v47, %s6558_s30  ;;  %v6590_v57 = vrot.slane %v5639_v30, 4  ;;  %v6591_v47 = vrot.slane %v5655_v24, 4 }
 0x175   : > { %v1300_v43 = vsel %vm520_vm0, %v6586_v54, %v1292_v58  ;;  %v1414_v49 = vsel %vm520_vm0, %v6587_v14, %v1406_v32  ;;  %v1620_v44 = vpop.permute.xlu1 %1619  ;;  %304 = vrot.lane.b32.xlu1 %v281_v31, %s6558_s30  ;;  %s213_s30 = sand.u32 1, %s5040_s12   ;;  %s4786_s12 = smul.u32 (%p5161_p5), 44, %s5052_s15 }
 0x176   : > { %v1301_v2 = vsel %vm6588_vm10, %v5624_v10, %v1300_v43  ;;  %v1415_v9 = vsel %vm6589_vm11, %v5637_v29, %v1414_v49  ;;  %v1506_v6 = vpop.permute.xlu0 %1505  ;;  %v1628_v0 = vrot.slane %v1620_v44, 4  ;;  %vm6592_vm10 = vcmask 482304   ;;  %s4784_s9 = smul.u32 176, %s213_s30 }
 0x177   : > { %1315 = vst [vmem:[#allocation3 + $0xc0] sm:$0x33] %v1301_v2  ;;  %1429 = vst [vmem:[#allocation3 + $0xc0] sm:$0xcc] %v1415_v9  ;;  %v1514_v4 = vrot.slane %v1506_v6, 4  ;;  %vm6593_vm11 = vcmask 474112   ;;  %s4182_s23 = sadd.s32 (%p5161_p5), %s4786_s12, %s5175_s28 }
 0x178   : > { %v1636_v59 = vsel %vm520_vm0, %v6591_v47, %v1628_v0  ;;  %s6376_s25 = scalar_lea.vmem [#allocation4], %s4784_s9  ;;  %s4590_s26 = sshll.u32 (%p5161_p5), %s4182_s23, 3 }
 0x179   : > { %v1522_v45 = vsel %vm520_vm0, %v6590_v57, %v1514_v4  ;;  %v1637_v29 = vsel %vm6593_vm11, %v5655_v24, %v1636_v59  ;;  %v6091_v63 = vpop.permute.xlu1 %1399  ;;  %vm6595_vm11 = vcmask 490496   ;;  %s6429_s15 = scalar_lea.vmem (%p5161_p5), %s6487_s3, %s4590_s26 }
 0x17a   : > { %v1523_v10 = vsel %vm6592_vm10, %v5639_v30, %v1522_v45  ;;  %v6089_v60 = vpop.permute.xlu0 %1285  ;;  %v4952_v56 = vld [vmem:[#allocation3 + $0x120] ss:$44 sps:$4 sm:$0xff]   ;;  %v4954_v31 = vld [vmem:[#allocation3 + $0x124] ss:$44 sps:$4 sm:$0xff]   ;;  %1651 = vst [vmem:[#allocation3 + $0xec] sm:$0xcc] %v1637_v29 }
 0x17b   : > { %1537 = vst [vmem:[#allocation3 + $0xec] sm:$0x33] %v1523_v10  ;;  %v1293_v54 = vrot.slane %v6089_v60, 4  ;;  %v1407_v43 = vrot.slane %v6091_v63, 4  ;;  %3993 = vmatprep.subr.bf16.mxu1 %v4954_v31  ;;  %vm6594_vm10 = vcmask 736256  }
 0x17c   : > { %3994 = vmatpush1.bf16.msra.mxu1 %v4952_v56 }
 0x17d   : > { %v1302_v30 = vsel %vm520_vm0, %v1292_v58, %v1293_v54  ;;  %v1416_v24 = vsel %vm520_vm0, %v1406_v32, %v1407_v43  ;;  %v6105_v9 = vpop.permute.xlu1 %1621 }
 0x17e   : > { %v1303_v14 = vsel %vm6594_vm10, %v1284_v19, %v1302_v30  ;;  %v1417_v49 = vsel %vm6595_vm11, %v1398_v40, %v1416_v24  ;;  %v6103_v2 = vpop.permute.xlu0 %1507  ;;  %v1629_v45 = vrot.slane %v6105_v9, 4  ;;  %vm6596_vm10 = vcmask 482304  }
 0x17f   : > { %1316 = vst [vmem:[#allocation3 + $0xc8] sm:$0x33] %v1303_v14  ;;  %1430 = vst [vmem:[#allocation3 + $0xc8] sm:$0xcc] %v1417_v49  ;;  %v1515_v57 = vrot.slane %v6103_v2, 4  ;;  %vm6597_vm11 = vcmask 474112  }
 0x180   : > { %v1638_v19 = vsel %vm520_vm0, %v1628_v0, %v1629_v45  ;;  %v6598_v30 = vrot.slane %v5701_v16, 4  ;;  %v6599_v24 = vrot.slane %v5716_v20, 4 }
 0x181   : > { %v1524_v58 = vsel %vm520_vm0, %v1514_v4, %v1515_v57  ;;  %v1639_v32 = vsel %vm6597_vm11, %v1620_v44, %v1638_v19  ;;  %v954_v59 = vpop.permute.xlu1 %953  ;;  %vm6603_vm11 = vcmask 752640  }
 0x182   : > { %v1525_v40 = vsel %vm6596_vm10, %v1506_v6, %v1524_v58  ;;  %v840_v47 = vpop.permute.xlu0 %839  ;;  %v4955_v10 = vld [vmem:[#allocation3 + $0xc0] ss:$44 sps:$4 sm:$0xff]   ;;  %v4957_v29 = vld [vmem:[#allocation3 + $0xc4] ss:$44 sps:$4 sm:$0xff]   ;;  %1652 = vst [vmem:[#allocation3 + $0xf4] sm:$0xcc] %v1639_v32 }
 0x183   : > { %1538 = vst [vmem:[#allocation3 + $0xf4] sm:$0x33] %v1525_v40  ;;  %v848_v56 = vrot.slane %v840_v47, 4  ;;  %v962_v31 = vrot.slane %v954_v59, 4  ;;  %3954 = vmatprep.subr.bf16.mxu0 %v4957_v29  ;;  %vm6600_vm10 = vcmask 883712   ;;  %v6601_v40 = vrot.slane %v5718_v12, 4 }
 0x184   : > { %3955 = vmatpush1.bf16.msra.mxu0 %v4955_v10  ;;  %v6602_v29 = vrot.slane %v5736_v55, 4 }
 0x185   : > { %v856_v4 = vsel %vm520_vm0, %v6598_v30, %v848_v56  ;;  %v970_v0 = vsel %vm520_vm0, %v6599_v24, %v962_v31  ;;  %v1176_v49 = vpop.permute.xlu1 %1175 }
 0x186   : > { %v857_v6 = vsel %vm852_vm13, %v5701_v16, %v856_v4  ;;  %v971_v44 = vsel %vm6600_vm10, %v5716_v20, %v970_v0  ;;  %v1062_v14 = vpop.permute.xlu0 %1061  ;;  %v1184_v19 = vrot.slane %v1176_v49, 4 }
 0x187   : > { %871 = vst [vmem:[#allocation3 + $0x68] sm:$0x33] %v857_v6  ;;  %985 = vst [vmem:[#allocation3 + $0x68] sm:$0xcc] %v971_v44  ;;  %v1070_v58 = vrot.slane %v1062_v14, 4 }
 0x188   : > { %v1192_v10 = vsel %vm520_vm0, %v6602_v29, %v1184_v19 }
 0x189   : > { %v1078_v32 = vsel %vm520_vm0, %v6601_v40, %v1070_v58  ;;  %v1193_v20 = vsel %vm6604_vm9, %v5736_v55, %v1192_v10  ;;  %v6139_v4 = vpop.permute.xlu1 %955  ;;  %vm6605_vm9 = vmmov %vm6600_vm10 }
 0x18a   : > { %v1079_v16 = vsel %vm6603_vm11, %v5718_v12, %v1078_v32  ;;  %v6137_v30 = vpop.permute.xlu0 %841  ;;  %v4958_v24 = vld [vmem:[#allocation3 + $0xc8] ss:$44 sps:$4 sm:$0xff]   ;;  %v4960_v0 = vld [vmem:[#allocation3 + $0xcc] ss:$44 sps:$4 sm:$0xff]   ;;  %1207 = vst [vmem:[#allocation3 + $0x94] sm:$0xcc] %v1193_v20  ;;  %vm6606_vm10 = vmmov %vm6603_vm11 }
 0x18b   : > { %1093 = vst [vmem:[#allocation3 + $0x94] sm:$0x33] %v1079_v16  ;;  %v849_v6 = vrot.slane %v6137_v30, 4  ;;  %v6549_v44 = vrot.slane %v6139_v4, 4  ;;  %3995 = vmatprep.subr.bf16.mxu1 %v4960_v0  ;;  %vm6607_vm11 = vcmask 744448  }
 0x18c   : > { %3996 = vmatpush1.bf16.msra.mxu1 %v4958_v24 }
 0x18d   : > { %v858_v12 = vsel %vm520_vm0, %v848_v56, %v849_v6  ;;  %v972_v55 = vsel %vm520_vm0, %v962_v31, %v6549_v44  ;;  %v6153_v10 = vpop.permute.xlu1 %1177  ;;  %v6608_v44 = vrot.slane %v5765_v33, 4 }
 0x18e   : > { %v859_v40 = vsel %vm852_vm13, %v840_v47, %v858_v12  ;;  %v973_v32 = vsel %vm6605_vm9, %v954_v59, %v972_v55  ;;  %v6151_v29 = vpop.permute.xlu0 %1063  ;;  %v6552_v20 = vrot.slane %v6153_v10, 4 }
 0x18f   : > { %872 = vst [vmem:[#allocation3 + $0x70] sm:$0x33] %v859_v40  ;;  %986 = vst [vmem:[#allocation3 + $0x70] sm:$0xcc] %v973_v32  ;;  %v6550_v16 = vrot.slane %v6151_v29, 4 }
 0x190   : > { %v1194_v47 = vsel %vm520_vm0, %v1184_v19, %v6552_v20 }
 0x191   : > { %v1080_v56 = vsel %vm520_vm0, %v1070_v58, %v6550_v16  ;;  %v1195_v31 = vsel %vm6607_vm11, %v1176_v49, %v1194_v47  ;;  %v618_v0 = vpop.permute.xlu1 %617  ;;  %v6609_v16 = vrot.slane %v5778_v35, 4  ;;  %vm6623_vm11 = vcmask 326656  }
 0x192   : > { %v1081_v59 = vsel %vm6606_vm10, %v1062_v14, %v1080_v56  ;;  %v509_v24 = vpop.permute.xlu0 %508  ;;  %v4961_v12 = vld [vmem:[#allocation3 + $0x68] ss:$44 sps:$4 sm:$0xff]   ;;  %v4963_v55 = vld [vmem:[#allocation3 + $0x6c] ss:$44 sps:$4 sm:$0xff]   ;;  %1208 = vst [vmem:[#allocation3 + $0x9c] sm:$0xcc] %v1195_v31 }
 0x193   : > { %1094 = vst [vmem:[#allocation3 + $0x9c] sm:$0x33] %v1081_v59  ;;  %v517_v40 = vrot.slane %v509_v24, 4  ;;  %v626_v32 = vrot.slane %v618_v0, 4  ;;  %3956 = vmatprep.subr.bf16.mxu0 %v4963_v55  ;;  %vm6622_vm10 = vcmask 334848  }
 0x194   : > { %3957 = vmatpush1.bf16.msra.mxu0 %v4961_v12 }
 0x195   : > { %v526_v58 = vsel %vm520_vm0, %v6608_v44, %v517_v40  ;;  %v634_v19 = vsel %vm520_vm0, %v6609_v16, %v626_v32  ;;  %v6175_v47 = vpop.permute.xlu1 %510  ;;  %v6610_v44 = vrot.slane %v5780_v15, 4 }
 0x196   : > { %v527_v14 = vsel %vm522_vm15, %v5765_v33, %v526_v58  ;;  %v635_v49 = vsel %vm630_vm14, %v5778_v35, %v634_v19  ;;  %v732_v56 = vpop.permute.xlu0 %731  ;;  %v6551_v31 = vrot.slane %v6175_v47, 4 }
 0x197   : > { %541 = vst [vmem:[#allocation3 + $0x10] sm:$0xcc] %v527_v14  ;;  %649 = vst [vmem:[#allocation3 + $0x3c] sm:$0x33] %v635_v49  ;;  %v740_v59 = vrot.slane %v732_v56, 4 }
 0x198   : > { %v528_v16 = vsel %vm520_vm0, %v517_v40, %v6551_v31 }
 0x199   : > { %v748_v55 = vsel %vm520_vm0, %v6610_v44, %v740_v59  ;;  %v529_v35 = vsel %vm522_vm15, %v509_v24, %v528_v16  ;;  %v6189_v58 = vpop.permute.xlu1 %733 }
 0x19a   : > { %v749_v33 = vsel %vm744_vm12, %v5780_v15, %v748_v55  ;;  %v6187_v12 = vpop.permute.xlu0 %619  ;;  %v4964_v19 = vld [vmem:[#allocation3 + $0x70] ss:$44 sps:$4 sm:$0xff]   ;;  %v4966_v14 = vld [vmem:[#allocation3 + $0x74] ss:$44 sps:$4 sm:$0xff]   ;;  %542 = vst [vmem:[#allocation3 + $0x18] sm:$0xcc] %v529_v35 }
 0x19b   : > { %763 = vst [vmem:[#allocation3 + $0x3c] sm:$0xcc] %v749_v33  ;;  %v6553_v49 = vrot.slane %v6187_v12, 4  ;;  %v741_v44 = vrot.slane %v6189_v58, 4  ;;  %3997 = vmatprep.subr.bf16.mxu1 %v4966_v14  ;;  %v6611_v14 = vrot.slane %v5815_v5, 4 }
 0x19c   : > { %3998 = vmatpush1.bf16.msra.mxu1 %v4964_v19 }
 0x19d   : > { %v636_v40 = vsel %vm520_vm0, %v626_v32, %v6553_v49  ;;  %v750_v15 = vsel %vm520_vm0, %v740_v59, %v741_v44  ;;  %v3178_v33 = vpop.permute.xlu1 %3177  ;;  %v6612_v49 = vrot.slane %v5842_v39, 4 }
 0x19e   : > { %v637_v24 = vsel %vm630_vm14, %v618_v0, %v636_v40  ;;  %v751_v55 = vsel %vm744_vm12, %v732_v56, %v750_v15  ;;  %v3064_v16 = vpop.permute.xlu0 %3063  ;;  %v3184_v31 = vrot.slane %v3178_v33, 4 }
 0x19f   : > { %650 = vst [vmem:[#allocation3 + $0x44] sm:$0x33] %v637_v24  ;;  %764 = vst [vmem:[#allocation3 + $0x44] sm:$0xcc] %v751_v55  ;;  %v3070_v35 = vrot.slane %v3064_v16, 4 }
 0x1a0   : > { %v3194_v59 = vsel %vm520_vm0, %v6612_v49, %v3184_v31  ;;  %v3196_v0 = vsel %vm3186_vm3, %v3178_v33, %v3184_v31  ;;  %v6613_v49 = vrot.slane %v5844_v11, 4 }
 0x1a1   : > { %v3080_v20 = vsel %vm520_vm0, %v6611_v14, %v3070_v35  ;;  %v3082_v32 = vsel %vm3072_vm1, %v3064_v16, %v3070_v35  ;;  %v3195_v19 = vsel %vm3186_vm3, %v5842_v39, %v3194_v59  ;;  %3208 = vst [vmem:[#allocation3 + $0x238] sm:$0xc] %v3196_v0  ;;  %v2620_v15 = vpop.permute.xlu1 %2619  ;;  %vm6615_vm3 = vcmask 982016  }
 0x1a2   : > { %v3081_v56 = vsel %vm3072_vm1, %v5815_v5, %v3080_v20  ;;  %3094 = vst [vmem:[#allocation3 + $0x238] sm:$0x3] %v3082_v32  ;;  %v3286_v40 = vpop.permute.xlu0 %3285  ;;  %v4968_v24 = vld [vmem:[#allocation3 + $0x10] ss:$44 sps:$4 sm:$0xff]   ;;  %v4970_v55 = vld [vmem:[#allocation3 + $0x14] ss:$44 sps:$4 sm:$0xff]  }
 0x1a3   : > { %3093 = vst [vmem:[#allocation3 + $0x230] sm:$0x33] %v3081_v56  ;;  %3207 = vst [vmem:[#allocation3 + $0x230] sm:$0xcc] %v3195_v19  ;;  %v3292_v16 = vrot.slane %v3286_v40, 4  ;;  %v2626_v35 = vrot.slane %v2620_v15, 4  ;;  %3958 = vmatprep.subr.bf16.mxu0 %v4970_v55 }
 0x1a4   : > { %3959 = vmatpush1.bf16.msra.mxu0 %v4968_v24  ;;  %vm5094_vm1 = vmmov 0  }
 0x1a5   : > { %v3302_v31 = vsel %vm520_vm0, %v6613_v49, %v3292_v16  ;;  %v3304_v5 = vsel %vm3294_vm2, %v3286_v40, %v3292_v16  ;;  %v2636_v39 = vsel %vm520_vm0, %v2625_v48, %v2626_v35  ;;  %v2638_v20 = vsel %vm2628_vm4, %v2620_v15, %v2626_v35  ;;  %v2842_v59 = vpop.permute.xlu1 %2841  ;;  %4026 = vmatprep.subr.bf16.mxu0 %v5822_v7  ;;  %v4975_v7 = vld [vmem:[#allocation3 + $0x290] ss:$44 sps:$4 sm:$0xff]  }
 0x1a6   : > { %v3303_v33 = vsel %vm3294_vm2, %v5844_v11, %v3302_v31  ;;  %3316 = vst [vmem:[#allocation3 + $0x264] sm:$0x3] %v3304_v5  ;;  %v2637_v14 = vsel %vm2628_vm4, %v5902_v25, %v2636_v39  ;;  %2650 = vst [vmem:[#allocation3 + $0x1e0] sm:$0x3] %v2638_v20  ;;  %v2734_v32 = vpop.permute.xlu0 %2733  ;;  %v4972_v0 = vld [vmem:[#allocation3 + $0x18] ss:$44 sps:$4 sm:$0xff]  }
 0x1a7   : > { %v4974_v56 = vld [vmem:[#allocation3 + $0x1c] ss:$44 sps:$4 sm:$0xff]   ;;  %3315 = vst [vmem:[#allocation3 + $0x25c] sm:$0x33] %v3303_v33  ;;  %2649 = vst [vmem:[#allocation3 + $0x1d8] sm:$0x33] %v2637_v14  ;;  %3977 = vmatmul.mubr.bf16.vlgmr.msra.gmra.mxu0 %v5837_v50 }
 0x1a8   : > { %v2740_v48 = vrot.slane %v2734_v32, 4  ;;  %v2848_v19 = vrot.slane %v2842_v59, 4  ;;  %3999 = vmatprep.subr.bf16.mxu1 %v4974_v56  ;;  %v5093_v35 = vmov 0.0   ;;  %4027 = vmatpush1.bf16.msra.mxu0 %v5848_v53  ;;  %vm6614_vm2 = vcmask 179200  }
 0x1a9   : > { %4000 = vmatpush1.bf16.msra.mxu1 %v4972_v0  ;;  %4058 = vmatprep.mubr.bf16.mxu0 %v5818_v17  ;;  %vm6616_vm4 = vmmov %vm6614_vm2 }
 0x1aa   : > { %v2750_v11 = vsel %vm520_vm0, %v2739_v61, %v2740_v48  ;;  %v2752_v25 = vsel %vm2742_vm5, %v2734_v32, %v2740_v48  ;;  %v2858_v40 = vsel %vm520_vm0, %v2847_v18, %v2848_v19  ;;  %v2860_v15 = vsel %vm2850_vm6, %v2842_v59, %v2848_v19  ;;  %v2956_v16 = vpop.permute.xlu0 %2955  ;;  %v2176_v61 = vpop.permute.xlu1 %2175  ;;  %4764 = vmatprep.subr.bf16.mxu1 %v5093_v35 }
 0x1ab   : > { %v2751_v24 = vsel %vm2742_vm5, %v5904_v8, %v2750_v11  ;;  %2764 = vst [vmem:[#allocation3 + $0x1e0] sm:$0xc] %v2752_v25  ;;  %v2859_v55 = vsel %vm2850_vm6, %v5926_v42, %v2858_v40  ;;  %2872 = vst [vmem:[#allocation3 + $0x20c] sm:$0x3] %v2860_v15  ;;  %v2962_v18 = vrot.slane %v2956_v16, 4  ;;  %v2182_v49 = vrot.slane %v2176_v61, 4 }
 0x1ac   : > { %2763 = vst [vmem:[#allocation3 + $0x1d8] sm:$0xcc] %v2751_v24  ;;  %2871 = vst [vmem:[#allocation3 + $0x204] sm:$0x33] %v2859_v55  ;;  %4018 = vmatmul.mubr.bf16.vlgmr.msra.gmra.mxu1 %v5837_v50  ;;  %vm6618_vm6 = vcmask 973824  }
 0x1ad   : > { %v2972_v8 = vsel %vm520_vm0, %v2961_v26, %v2962_v18  ;;  %v2974_v42 = vsel %vm2964_vm7, %v2956_v16, %v2962_v18  ;;  %v2192_v31 = vsel %vm520_vm0, %v2181_v46, %v2182_v49  ;;  %v2194_v53 = vsel %vm2184_vm8, %v2176_v61, %v2182_v49  ;;  %4765 = vmatpush3.bf16.msra.mxu1 %v4975_v7  ;;  %v4979_v14 = vld [vmem:[#allocation3 + $0x238] ss:$44 sps:$4 sm:$0xff]   ;;  %vm6617_vm5 = vmmov %vm6615_vm3 }
 0x1ae   : > { %v2973_v5 = vsel %vm2964_vm7, %v5928_v52, %v2972_v8  ;;  %2986 = vst [vmem:[#allocation3 + $0x20c] sm:$0xc] %v2974_v42  ;;  %v2193_v17 = vsel %vm2184_vm8, %v5972_v27, %v2192_v31  ;;  %2206 = vst [vmem:[#allocation3 + $0x188] sm:$0x3] %v2194_v53  ;;  %v2290_v50 = vpop.permute.xlu0 %2289  ;;  %v2398_v39 = vpop.permute.xlu1 %2397  ;;  %v4976_v26 = vld [vmem:[#allocation3 + $0x230] ss:$44 sps:$4 sm:$0xff]   ;;  %4766 = vmatprep.subr.bf16.mxu1 %v5093_v35  ;;  %4780 = vmatprep.mubr.msk.bf16.mxu1 %vm5094_vm1, %v5093_v35 }
 0x1af   : > { %v4978_v20 = vld [vmem:[#allocation3 + $0x234] ss:$44 sps:$4 sm:$0xff]   ;;  %2985 = vst [vmem:[#allocation3 + $0x204] sm:$0xcc] %v2973_v5  ;;  %2205 = vst [vmem:[#allocation3 + $0x180] sm:$0x33] %v2193_v17 }
 0x1b0   : > { %v2296_v46 = vrot.slane %v2290_v50, 4  ;;  %v2404_v33 = vrot.slane %v2398_v39, 4  ;;  %4028 = vmatprep.subr.bf16.mxu0 %v4978_v20  ;;  %vm6619_vm7 = vcmask 343040   ;;  %vm6620_vm8 = vmmov %vm6618_vm6 }
 0x1b1   : > { %4767 = vmatpush3.bf16.msra.mxu1 %v4979_v14  ;;  %4029 = vmatpush1.bf16.msra.mxu0 %v4976_v26  ;;  %vm6621_vm9 = vmmov %vm6619_vm7 }
 0x1b2   : > { %v2306_v52 = vsel %vm520_vm0, %v2295_v41, %v2296_v46  ;;  %v2308_v27 = vsel %vm6614_vm2, %v2290_v50, %v2296_v46  ;;  %v2414_v32 = vsel %vm520_vm0, %v2403_v3, %v2404_v33  ;;  %v2416_v59 = vsel %vm6615_vm3, %v2398_v39, %v2404_v33  ;;  %v2512_v48 = vpop.permute.xlu0 %2511  ;;  %v1732_v19 = vpop.permute.xlu1 %1731  ;;  %4768 = vmatprep.subr.bf16.mxu1 %v5093_v35  ;;  %vm6624_vm1 = vmmov %vm6622_vm10 }
 0x1b3   : > { %v2307_v0 = vsel %vm6616_vm4, %v5974_v38, %v2306_v52  ;;  %2320 = vst [vmem:[#allocation3 + $0x188] sm:$0xc] %v2308_v27  ;;  %v2415_v56 = vsel %vm6617_vm5, %v5989_v21, %v2414_v32  ;;  %2428 = vst [vmem:[#allocation3 + $0x1b4] sm:$0x3] %v2416_v59  ;;  %v2518_v41 = vrot.slane %v2512_v48, 4  ;;  %v1738_v3 = vrot.slane %v1732_v19, 4 }
 0x1b4   : > { %2319 = vst [vmem:[#allocation3 + $0x180] sm:$0xcc] %v2307_v0  ;;  %2427 = vst [vmem:[#allocation3 + $0x1ac] sm:$0x33] %v2415_v56  ;;  %vm6626_vm3 = vcmask 195584   ;;  %vm6627_vm4 = vcmask 736256  }
 0x1b5   : > { %v2528_v11 = vsel %vm520_vm0, %v2517_v51, %v2518_v41  ;;  %v2530_v38 = vsel %vm6618_vm6, %v2512_v48, %v2518_v41  ;;  %v1748_v21 = vsel %vm520_vm0, %v1737_v22, %v1738_v3  ;;  %v1750_v25 = vsel %vm6619_vm7, %v1732_v19, %v1738_v3  ;;  %v4980_v40 = vld [vmem:[#allocation3 + $0x1e0] ss:$44 sps:$4 sm:$0xff]   ;;  %vm6625_vm2 = vmmov %vm6623_vm11 }
 0x1b6   : > { %v2529_v15 = vsel %vm6620_vm8, %v5991_v36, %v2528_v11  ;;  %2542 = vst [vmem:[#allocation3 + $0x1b4] sm:$0xc] %v2530_v38  ;;  %v1749_v7 = vsel %vm6621_vm9, %v6031_v37, %v1748_v21  ;;  %1762 = vst [vmem:[#allocation3 + $0x130] sm:$0x3] %v1750_v25  ;;  %v1846_v24 = vpop.permute.xlu0 %1845  ;;  %v1954_v55 = vpop.permute.xlu1 %1953  ;;  %v4981_v51 = vld [vmem:[#allocation3 + $0x1d8] ss:$44 sps:$4 sm:$0xff]   ;;  %4769 = vmatpush3.bf16.msra.mxu1 %v4980_v40 }
 0x1b7   : > { %v4983_v16 = vld [vmem:[#allocation3 + $0x1dc] ss:$44 sps:$4 sm:$0xff]   ;;  %2541 = vst [vmem:[#allocation3 + $0x1ac] sm:$0xcc] %v2529_v15  ;;  %1761 = vst [vmem:[#allocation3 + $0x128] sm:$0x33] %v1749_v7  ;;  %4770 = vmatprep.subr.bf16.mxu1 %v5093_v35 }
 0x1b8   : > { %v1852_v61 = vrot.slane %v1846_v24, 4  ;;  %v1960_v18 = vrot.slane %v1954_v55, 4  ;;  %4030 = vmatprep.subr.bf16.mxu0 %v4983_v16  ;;  %vm6628_vm5 = vmmov %vm6626_vm3  ;;  %vm6630_vm7 = vcmask 490496   ;;  %vm6631_vm8 = vcmask 482304  }
 0x1b9   : > { %4031 = vmatpush1.bf16.msra.mxu0 %v4981_v51  ;;  %vm6629_vm6 = vmmov %vm6627_vm4 }
 0x1ba   : > { %v1862_v36 = vsel %vm520_vm0, %v1851_v34, %v1852_v61  ;;  %v1864_v22 = vsel %vm6622_vm10, %v1846_v24, %v1852_v61  ;;  %v1970_v37 = vsel %vm520_vm0, %v1959_v62, %v1960_v18  ;;  %v1972_v49 = vsel %vm6623_vm11, %v1954_v55, %v1960_v18  ;;  %v2068_v31 = vpop.permute.xlu0 %2067  ;;  %v1288_v53 = vpop.permute.xlu1 %1287  ;;  %vm6632_vm9 = vmmov %vm6630_vm7 }
 0x1bb   : > { %v1863_v8 = vsel %vm6624_vm1, %v6033_v23, %v1862_v36  ;;  %1876 = vst [vmem:[#allocation3 + $0x130] sm:$0xc] %v1864_v22  ;;  %v1971_v42 = vsel %vm6625_vm2, %v6049_v13, %v1970_v37  ;;  %1984 = vst [vmem:[#allocation3 + $0x15c] sm:$0x3] %v1972_v49  ;;  %v2074_v34 = vrot.slane %v2068_v31, 4  ;;  %v1294_v5 = vrot.slane %v1288_v53, 4 }
 0x1bc   : > { %1875 = vst [vmem:[#allocation3 + $0x128] sm:$0xcc] %v1863_v8  ;;  %1983 = vst [vmem:[#allocation3 + $0x154] sm:$0x33] %v1971_v42  ;;  %vm6634_vm11 = vcmask 474112   ;;  %vm6637_vm2 = vcmask 883712  }
 0x1bd   : > { %v2084_v62 = vsel %vm520_vm0, %v2073_v1, %v2074_v34  ;;  %v2086_v17 = vsel %vm6626_vm3, %v2068_v31, %v2074_v34  ;;  %v1304_v23 = vsel %vm520_vm0, %v1293_v54, %v1294_v5  ;;  %v1306_v50 = vsel %vm6627_vm4, %v1288_v53, %v1294_v5  ;;  %v4984_v13 = vld [vmem:[#allocation3 + $0x188] ss:$44 sps:$4 sm:$0xff]   ;;  %vm6633_vm10 = vmmov %vm6631_vm8 }
 0x1be   : > { %v2085_v39 = vsel %vm6628_vm5, %v6051_v28, %v2084_v62  ;;  %2098 = vst [vmem:[#allocation3 + $0x15c] sm:$0xc] %v2086_v17  ;;  %v1305_v26 = vsel %vm6629_vm6, %v6089_v60, %v1304_v23  ;;  %1318 = vst [vmem:[#allocation3 + $0xd8] sm:$0x3] %v1306_v50  ;;  %v1402_v20 = vpop.permute.xlu0 %1401  ;;  %v1510_v46 = vpop.permute.xlu1 %1509  ;;  %v4985_v1 = vld [vmem:[#allocation3 + $0x180] ss:$44 sps:$4 sm:$0xff]   ;;  %4771 = vmatpush3.bf16.msra.mxu1 %v4984_v13 }
 0x1bf   : > { %v4987_v33 = vld [vmem:[#allocation3 + $0x184] ss:$44 sps:$4 sm:$0xff]   ;;  %2097 = vst [vmem:[#allocation3 + $0x154] sm:$0xcc] %v2085_v39  ;;  %1317 = vst [vmem:[#allocation3 + $0xd0] sm:$0x33] %v1305_v26  ;;  %4772 = vmatprep.subr.bf16.mxu1 %v5093_v35 }
 0x1c0   : > { %v1408_v14 = vrot.slane %v1402_v20, 4  ;;  %v1516_v52 = vrot.slane %v1510_v46, 4  ;;  %4032 = vmatprep.subr.bf16.mxu0 %v4987_v33  ;;  %vm6635_vm1 = vmmov %vm6634_vm11  ;;  %v6642_v37 = vrot.slane %v6153_v10, 4  ;;  %vm6643_vm5 = vcmask 744448  }
 0x1c1   : > { %4033 = vmatpush1.bf16.msra.mxu0 %v4985_v1  ;;  %vm6640_vm3 = vmmov %vm6637_vm2  ;;  %v6644_v42 = vrot.slane %v6175_v47, 4  ;;  %v6646_v39 = vrot.slane %v6187_v12, 4 }
 0x1c2   : > { %v1418_v28 = vsel %vm520_vm0, %v1407_v43, %v1408_v14  ;;  %v1420_v54 = vsel %vm6630_vm7, %v1402_v20, %v1408_v14  ;;  %v1526_v60 = vsel %vm520_vm0, %v1515_v57, %v1516_v52  ;;  %v1528_v27 = vsel %vm6631_vm8, %v1510_v46, %v1516_v52  ;;  %v1624_v0 = vpop.permute.xlu0 %1623  ;;  %v844_v56 = vpop.permute.xlu1 %843  ;;  %vm6645_vm6 = vmmov %vm6643_vm5 }
 0x1c3   : > { %v1419_v32 = vsel %vm6632_vm9, %v6091_v63, %v1418_v28  ;;  %1432 = vst [vmem:[#allocation3 + $0xd8] sm:$0xc] %v1420_v54  ;;  %v1527_v59 = vsel %vm6633_vm10, %v6103_v2, %v1526_v60  ;;  %1540 = vst [vmem:[#allocation3 + $0x104] sm:$0x3] %v1528_v27  ;;  %v1630_v43 = vrot.slane %v1624_v0, 4  ;;  %v850_v48 = vrot.slane %v844_v56, 4 }
 0x1c4   : > { %1431 = vst [vmem:[#allocation3 + $0xd0] sm:$0xcc] %v1419_v32  ;;  %1539 = vst [vmem:[#allocation3 + $0xfc] sm:$0x33] %v1527_v59 }
 0x1c5   : > { %v1640_v57 = vsel %vm520_vm0, %v1629_v45, %v1630_v43  ;;  %v1642_v19 = vsel %vm6634_vm11, %v1624_v0, %v1630_v43  ;;  %v860_v63 = vsel %vm520_vm0, %v849_v6, %v850_v48  ;;  %v862_v41 = vsel %vm852_vm13, %v844_v56, %v850_v48  ;;  %v4988_v2 = vld [vmem:[#allocation3 + $0x130] ss:$44 sps:$4 sm:$0xff]  }
 0x1c6   : > { %v1641_v3 = vsel %vm6635_vm1, %v6105_v9, %v1640_v57  ;;  %1654 = vst [vmem:[#allocation3 + $0x104] sm:$0xc] %v1642_v19  ;;  %v861_v11 = vsel %vm852_vm13, %v6137_v30, %v860_v63  ;;  %874 = vst [vmem:[#allocation3 + $0x80] sm:$0x3] %v862_v41  ;;  %v958_v38 = vpop.permute.xlu0 %957  ;;  %v1066_v21 = vpop.permute.xlu1 %1065  ;;  %v4989_v45 = vld [vmem:[#allocation3 + $0x128] ss:$44 sps:$4 sm:$0xff]   ;;  %4773 = vmatpush3.bf16.msra.mxu1 %v4988_v2 }
 0x1c7   : > { %v4991_v25 = vld [vmem:[#allocation3 + $0x12c] ss:$44 sps:$4 sm:$0xff]   ;;  %1653 = vst [vmem:[#allocation3 + $0xfc] sm:$0xcc] %v1641_v3  ;;  %873 = vst [vmem:[#allocation3 + $0x78] sm:$0x33] %v861_v11  ;;  %4774 = vmatprep.subr.bf16.mxu1 %v5093_v35 }
 0x1c8   : > { %v964_v40 = vrot.slane %v958_v38, 4  ;;  %v1072_v15 = vrot.slane %v1066_v21, 4  ;;  %4034 = vmatprep.subr.bf16.mxu0 %v4991_v25  ;;  %v6636_v6 = vrot.slane %v6139_v4, 4  ;;  %v6638_v30 = vrot.slane %v6151_v29, 4 }
 0x1c9   : > { %vm6639_vm13 = vcmask 752640   ;;  %4035 = vmatpush1.bf16.msra.mxu0 %v4989_v45 }
 0x1ca   : > { %v974_v9 = vsel %vm520_vm0, %v6636_v6, %v964_v40  ;;  %v976_v7 = vsel %vm6637_vm2, %v958_v38, %v964_v40  ;;  %v1082_v24 = vsel %vm520_vm0, %v6638_v30, %v1072_v15  ;;  %v1084_v55 = vsel %vm6639_vm13, %v1066_v21, %v1072_v15  ;;  %vm6641_vm4 = vmmov %vm6639_vm13  ;;  %v1180_v61 = vpop.permute.xlu0 %1179  ;;  %v513_v18 = vpop.permute.xlu1 %512 }
 0x1cb   : > { %v975_v51 = vsel %vm6640_vm3, %v6139_v4, %v974_v9  ;;  %988 = vst [vmem:[#allocation3 + $0x80] sm:$0xc] %v976_v7  ;;  %v1083_v16 = vsel %vm6641_vm4, %v6151_v29, %v1082_v24  ;;  %1096 = vst [vmem:[#allocation3 + $0xac] sm:$0x3] %v1084_v55  ;;  %v1186_v36 = vrot.slane %v1180_v61, 4  ;;  %v519_v22 = vrot.slane %v513_v18, 4 }
 0x1cc   : > { %987 = vst [vmem:[#allocation3 + $0x78] sm:$0xcc] %v975_v51  ;;  %1095 = vst [vmem:[#allocation3 + $0xa4] sm:$0x33] %v1083_v16 }
 0x1cd   : > { %v1196_v49 = vsel %vm520_vm0, %v6642_v37, %v1186_v36  ;;  %v1198_v8 = vsel %vm6643_vm5, %v1180_v61, %v1186_v36  ;;  %v530_v4 = vsel %vm520_vm0, %v6644_v42, %v519_v22  ;;  %v532_v31 = vsel %vm522_vm15, %v513_v18, %v519_v22  ;;  %v4992_v29 = vld [vmem:[#allocation3 + $0xd8] ss:$44 sps:$4 sm:$0xff]  }
 0x1ce   : > { %v1197_v53 = vsel %vm6645_vm6, %v6153_v10, %v1196_v49  ;;  %1210 = vst [vmem:[#allocation3 + $0xac] sm:$0xc] %v1198_v8  ;;  %v531_v34 = vsel %vm522_vm15, %v6175_v47, %v530_v4  ;;  %544 = vst [vmem:[#allocation3 + $0x28] sm:$0xc] %v532_v31  ;;  %v622_v5 = vpop.permute.xlu0 %621  ;;  %v736_v62 = vpop.permute.xlu1 %735  ;;  %v4993_v17 = vld [vmem:[#allocation3 + $0xd0] ss:$44 sps:$4 sm:$0xff]   ;;  %4775 = vmatpush3.bf16.msra.mxu1 %v4992_v29 }
 0x1cf   : > { %v4995_v23 = vld [vmem:[#allocation3 + $0xd4] ss:$44 sps:$4 sm:$0xff]   ;;  %1209 = vst [vmem:[#allocation3 + $0xa4] sm:$0xcc] %v1197_v53  ;;  %543 = vst [vmem:[#allocation3 + $0x20] sm:$0xcc] %v531_v34  ;;  %4776 = vmatprep.subr.bf16.mxu1 %v5093_v35 }
 0x1d0   : > { %v628_v50 = vrot.slane %v622_v5, 4  ;;  %v742_v13 = vrot.slane %v736_v62, 4  ;;  %4036 = vmatprep.subr.bf16.mxu0 %v4995_v23 }
 0x1d1   : > { %4037 = vmatpush1.bf16.msra.mxu0 %v4993_v17 }
 0x1d2   : > { %v638_v10 = vsel %vm520_vm0, %v6646_v39, %v628_v50  ;;  %v640_v26 = vsel %vm630_vm14, %v622_v5, %v628_v50  ;;  %v752_v47 = vsel %vm520_vm0, %v741_v44, %v742_v13  ;;  %v754_v20 = vsel %vm744_vm12, %v736_v62, %v742_v13  ;;  %v285_v60 = vpop.permute.xlu1 %284 }
 0x1d3   : > { %v639_v46 = vsel %vm630_vm14, %v6187_v12, %v638_v10  ;;  %652 = vst [vmem:[#allocation3 + $0x54] sm:$0x3] %v640_v26  ;;  %v753_v1 = vsel %vm744_vm12, %v6189_v58, %v752_v47  ;;  %766 = vst [vmem:[#allocation3 + $0x54] sm:$0xc] %v754_v20  ;;  %v5009_v12 = vld [vmem:[%s6484_s0] sm:$0xf]  ;;  %v283_v58 = vpop.permute.xlu0 %282 }
 0x1d4   : > { %651 = vst [vmem:[#allocation3 + $0x4c] sm:$0x33] %v639_v46  ;;  %765 = vst [vmem:[#allocation3 + $0x4c] sm:$0xcc] %v753_v1  ;;  %vm6647_vm0 = vcmask 334848  }
 0x1d5   : > { %v4996_v33 = vld [vmem:[#allocation3 + $0x80] ss:$44 sps:$4 sm:$0xff]   ;;  %v307_v27 = vsel %vm6647_vm0, %v283_v58, %v285_v60  ;;  %vm6648_vm12 = vmmov %vm6647_vm0 }
 0x1d6   : > { %v4997_v14 = vld [vmem:[#allocation3 + $0x78] ss:$44 sps:$4 sm:$0xff]   ;;  %v4999_v52 = vld [vmem:[#allocation3 + $0x7c] ss:$44 sps:$4 sm:$0xff]   ;;  %4777 = vmatpush3.bf16.msra.mxu1 %v4996_v33  ;;  %329 = vst [vmem:[%s6376_s25] sm:$0xf] %v307_v27  ;;  %vm6649_vm14 = vmmov %vm6647_vm0 }
 0x1d7   : > { %4038 = vmatprep.subr.bf16.mxu0 %v4999_v52  ;;  %4778 = vmatprep.subr.bf16.mxu1 %v5093_v35  ;;  %v287_v35 = vpop.permute.xlu0 %286  ;;  %v289_v32 = vpop.permute.xlu1 %288  ;;  %vm6650_vm15 = vmmov %vm6647_vm0 }
 0x1d8   : > { %4039 = vmatpush1.bf16.msra.mxu0 %v4997_v14  ;;  %v308_v59 = vsel %vm6648_vm12, %v285_v60, %v287_v35  ;;  %v309_v0 = vsel %vm6649_vm14, %v287_v35, %v289_v32  ;;  %vm6651_vm7 = vmmov %vm6647_vm0 }
 0x1d9   : > { %330 = vst [vmem:[%s6376_s25 + $0x8] sm:$0xf] %v308_v59  ;;  %331 = vst [vmem:[%s6376_s25 + $0x10] sm:$0xf] %v309_v0 }
 0x1da   : > { %v5000_v44 = vld [vmem:[#allocation3 + $0x28] ss:$44 sps:$4 sm:$0xff]   ;;  %vm6652_vm8 = vmmov %vm6647_vm0 }
 0x1db   : > { %v5002_v28 = vld [vmem:[#allocation3 + $0x20] ss:$44 sps:$4 sm:$0xff]   ;;  %v5004_v54 = vld [vmem:[#allocation3 + $0x24] ss:$44 sps:$4 sm:$0xff]   ;;  %4779 = vmatpush3.bf16.msra.mxu1 %v5000_v44  ;;  %v291_v56 = vpop.permute.xlu0 %290  ;;  %v293_v43 = vpop.permute.xlu1 %292  ;;  %vm6653_vm9 = vmmov %vm6647_vm0 }
 0x1dc   : > { %4040 = vmatprep.subr.bf16.mxu0 %v5004_v54  ;;  %v310_v48 = vsel %vm6650_vm15, %v289_v32, %v291_v56  ;;  %v311_v57 = vsel %vm6651_vm7, %v291_v56, %v293_v43  ;;  %vm6654_vm10 = vmmov %vm6647_vm0 }
 0x1dd   : > { %4041 = vmatpush1.bf16.msra.mxu0 %v5002_v28  ;;  %332 = vst [vmem:[%s6376_s25 + $0x18] sm:$0xf] %v310_v48  ;;  %333 = vst [vmem:[%s6376_s25 + $0x20] sm:$0xf] %v311_v57 }
 0x1de   : > { %4781 = vmatmul.mubr.bf16.vlgmr.msra.gmra.mxu1 %v5009_v12  ;;  %vm6655_vm11 = vmmov %vm6647_vm0 }
 0x1df   : > { %v295_v19 = vpop.permute.xlu0 %294  ;;  %v297_v63 = vpop.permute.xlu1 %296  ;;  %vm6656_vm1 = vmmov %vm6647_vm0 }
 0x1e0   : > { %4059 = vmatmul.mubr.bf16.vlgmr.msra.gmra.mxu0 %v5009_v12  ;;  %v312_v41 = vsel %vm6652_vm8, %v293_v43, %v295_v19  ;;  %v313_v2 = vsel %vm6653_vm9, %v295_v19, %v297_v63  ;;  %vm6657_vm2 = vmmov %vm6647_vm0 }
 0x1e1   : > { %334 = vst [vmem:[%s6376_s25 + $0x28] sm:$0xf] %v312_v41  ;;  %335 = vst [vmem:[%s6376_s25 + $0x30] sm:$0xf] %v313_v2 }
 0x1e3   : > { %v299_v21 = vpop.permute.xlu0 %298  ;;  %v301_v22 = vpop.permute.xlu1 %300 }
 0x1e4   : > { %v314_v40 = vsel %vm6654_vm10, %v297_v63, %v299_v21  ;;  %v315_v37 = vsel %vm6655_vm11, %v299_v21, %v301_v22 }
 0x1e5   : > { %336 = vst [vmem:[%s6376_s25 + $0x38] sm:$0xf] %v314_v40  ;;  %337 = vst [vmem:[%s6376_s25 + $0x40] sm:$0xf] %v315_v37 }
 0x1e7   : > { %v303_v36 = vpop.permute.xlu0 %302  ;;  %v305_v8 = vpop.permute.xlu1 %304 }
 0x1e8   : > { %v316_v49 = vsel %vm6656_vm1, %v301_v22, %v303_v36  ;;  %v317_v42 = vsel %vm6657_vm2, %v303_v36, %v305_v8 }
 0x1e9   : > { %338 = vst [vmem:[%s6376_s25 + $0x48] sm:$0xf] %v316_v49  ;;  %339 = vst [vmem:[%s6376_s25 + $0x50] sm:$0xf] %v317_v42 }
 0x200   : > { %v3896_v3 = vpop.f32.mrf.mxu0 }
 0x201   : > { %v4107_v11 = vmax.f32 %v3896_v3, 0.0 }
 0x202   : > { %v3898_v38 = vpop.f32.mrf.mxu0 }
 0x203   : > { %v4129_v45 = vrot.slane %v4107_v11, 4  ;;  %v4108_v25 = vmax.f32 %v3898_v38, 0.0 }
 0x204   : > { %v3937_v15 = vpop.f32.mrf.mxu1  ;;  %v3900_v6 = vpop.f32.mrf.mxu0 }
 0x205   : > { %4151 = vst [vmem:[%s6376_s25 + $0x58] ss:$-84 sps:$4 sm:$0xff] %v4129_v45   ;;  %v4109_v9 = vmax.f32 %v3937_v15, 0.0  ;;  %v4130_v7 = vrot.slane %v4108_v25, 4 }
 0x206   : > { %v3939_v30 = vpop.f32.mrf.mxu1  ;;  %v3901_v24 = vpop.f32.mrf.mxu0 }
 0x207   : > { %v4131_v55 = vrot.slane %v4109_v9, 4  ;;  %4152 = vst [vmem:[%s6376_s25 + $0x60] ss:$-84 sps:$4 sm:$0xff] %v4130_v7   ;;  %v4110_v51 = vmax.f32 %v3939_v30, 0.0 }
 0x208   : > { %v3941_v16 = vpop.f32.mrf.mxu1 }
 0x209   : > { %4153 = vst [vmem:[%s6376_s25 + $0x68] ss:$-84 sps:$4 sm:$0xff] %v4131_v55   ;;  %v4132_v61 = vrot.slane %v4110_v51, 4 }
 0x20a   : > { %v3942_v18 = vpop.f32.mrf.mxu1 }
 0x20b   : > { %4154 = vst [vmem:[%s6376_s25 + $0x70] ss:$-84 sps:$4 sm:$0xff] %v4132_v61  }
 0x20c   : > { %v4197_v59 = vld [vmem:[%s6376_s25] sm:$0xff] (%p5161_p5)  ;;  %v4219_v11 = vld [vmem:[%s6376_s25 + $0x58] sm:$0xff] (%p5161_p5) }
 0x20d   : > { %4198 = vst [vmem:[%s6429_s15] sm:$0xff] (%p5161_p5), %v4197_v59  ;;  %4220 = vst [vmem:[%s6429_s15 + $0xb0] sm:$0xff] (%p5161_p5), %v4219_v11 }
 0x20e   : > { %v4199_v0 = vld [vmem:[%s6376_s25 + $0x8] sm:$0xff] (%p5161_p5)  ;;  %v4221_v38 = vld [vmem:[%s6376_s25 + $0x60] sm:$0xff] (%p5161_p5) }
 0x20f   : > { %4200 = vst [vmem:[%s6429_s15 + $0x8] sm:$0xff] (%p5161_p5), %v4199_v0  ;;  %4222 = vst [vmem:[%s6429_s15 + $0xb8] sm:$0xff] (%p5161_p5), %v4221_v38 }
 0x210   : > { %v4201_v56 = vld [vmem:[%s6376_s25 + $0x10] sm:$0xff] (%p5161_p5)  ;;  %v4223_v21 = vld [vmem:[%s6376_s25 + $0x68] sm:$0xff] (%p5161_p5) }
 0x211   : > { %4202 = vst [vmem:[%s6429_s15 + $0x10] sm:$0xff] (%p5161_p5), %v4201_v56  ;;  %4224 = vst [vmem:[%s6429_s15 + $0xc0] sm:$0xff] (%p5161_p5), %v4223_v21 }
 0x212   : > { %v4203_v43 = vld [vmem:[%s6376_s25 + $0x18] sm:$0xff] (%p5161_p5)  ;;  %v4225_v45 = vld [vmem:[%s6376_s25 + $0x70] sm:$0xff] (%p5161_p5) }
 0x213   : > { %4204 = vst [vmem:[%s6429_s15 + $0x18] sm:$0xff] (%p5161_p5), %v4203_v43  ;;  %4226 = vst [vmem:[%s6429_s15 + $0xc8] sm:$0xff] (%p5161_p5), %v4225_v45 }
 0x267   : > { %v3978_v4 = vpop.f32.mrf.mxu0 }
 0x268   : > { %v4111_v31 = vmax.f32 %v3978_v4, 0.0 }
 0x269   : > { %v3980_v29 = vpop.f32.mrf.mxu0 }
 0x26a   : > { %v4133_v53 = vrot.slane %v4111_v31, 4  ;;  %v4112_v34 = vmax.f32 %v3980_v29, 0.0 }
 0x26b   : > { %v3982_v62 = vpop.f32.mrf.mxu0 }
 0x26c   : > { %v4019_v5 = vpop.f32.mrf.mxu1  ;;  %4155 = vst [vmem:[%s6376_s25 + $0x78] ss:$-84 sps:$4 sm:$0xff] %v4133_v53   ;;  %v4134_v23 = vrot.slane %v4112_v34, 4 }
 0x26d   : > { %v4113_v17 = vmax.f32 %v4019_v5, 0.0  ;;  %v3983_v13 = vpop.f32.mrf.mxu0 }
 0x26e   : > { %v4021_v50 = vpop.f32.mrf.mxu1  ;;  %4156 = vst [vmem:[%s6376_s25 + $0x80] ss:$-84 sps:$4 sm:$0xff] %v4134_v23  }
 0x26f   : > { %v4135_v39 = vrot.slane %v4113_v17, 4  ;;  %v4114_v10 = vmax.f32 %v4021_v50, 0.0 }
 0x270   : > { %v4023_v26 = vpop.f32.mrf.mxu1 }
 0x271   : > { %4157 = vst [vmem:[%s6376_s25 + $0x88] ss:$-84 sps:$4 sm:$0xff] %v4135_v39   ;;  %v4136_v47 = vrot.slane %v4114_v10, 4 }
 0x272   : > { %v4024_v20 = vpop.f32.mrf.mxu1 }
 0x273   : > { %4158 = vst [vmem:[%s6376_s25 + $0x90] ss:$-84 sps:$4 sm:$0xff] %v4136_v47   ;;  %v4205_v48 = vld [vmem:[%s6376_s25 + $0x20] sm:$0xff] (%p5161_p5)  ;;  %v4227_v25 = vld [vmem:[%s6376_s25 + $0x78] sm:$0xff] (%p5161_p5) }
 0x274   : > { %4206 = vst [vmem:[%s6429_s15 + $0x20] sm:$0xff] (%p5161_p5), %v4205_v48  ;;  %4228 = vst [vmem:[%s6429_s15 + $0xd0] sm:$0xff] (%p5161_p5), %v4227_v25 }
 0x275   : > { %v4207_v57 = vld [vmem:[%s6376_s25 + $0x28] sm:$0xff] (%p5161_p5)  ;;  %v4229_v40 = vld [vmem:[%s6376_s25 + $0x80] sm:$0xff] (%p5161_p5) }
 0x276   : > { %4208 = vst [vmem:[%s6429_s15 + $0x28] sm:$0xff] (%p5161_p5), %v4207_v57  ;;  %4230 = vst [vmem:[%s6429_s15 + $0xd8] sm:$0xff] (%p5161_p5), %v4229_v40 }
 0x278   : > { %v4209_v19 = vld [vmem:[%s6376_s25 + $0x30] sm:$0xff] (%p5161_p5)  ;;  %v4231_v15 = vld [vmem:[%s6376_s25 + $0x88] sm:$0xff] (%p5161_p5) }
 0x279   : > { %4210 = vst [vmem:[%s6429_s15 + $0x30] sm:$0xff] (%p5161_p5), %v4209_v19  ;;  %4232 = vst [vmem:[%s6429_s15 + $0xe0] sm:$0xff] (%p5161_p5), %v4231_v15 }
 0x27a   : > { %v4211_v63 = vld [vmem:[%s6376_s25 + $0x38] sm:$0xff] (%p5161_p5)  ;;  %v4233_v6 = vld [vmem:[%s6376_s25 + $0x90] sm:$0xff] (%p5161_p5) }
 0x27b   : > { %4212 = vst [vmem:[%s6429_s15 + $0x38] sm:$0xff] (%p5161_p5), %v4211_v63  ;;  %4234 = vst [vmem:[%s6429_s15 + $0xe8] sm:$0xff] (%p5161_p5), %v4233_v6 }
 0x29e   : > { %v4101_v46 = vpop.f32.mrf.mxu1 }
 0x29f   : > { %v4117_v1 = vmax.f32 %v4101_v46, 0.0 }
 0x2a0   : > { %v4060_v33 = vpop.f32.mrf.mxu0  ;;  %v4782_v14 = vpop.f32.mrf.mxu1 }
 0x2a1   : > { %v4139_v52 = vrot.slane %v4117_v1, 4  ;;  %v4115_v44 = vmax.f32 %v4060_v33, 0.0 }
 0x2a2   : > { %v4062_v28 = vpop.f32.mrf.mxu0  ;;  %v4104_v54 = vpop.f32.mrf.mxu1 }
 0x2a3   : > { %4161 = vst [vmem:[%s6376_s25 + $0xa8] ss:$-84 sps:$4 sm:$0xff] %v4139_v52   ;;  %v4137_v12 = vrot.slane %v4115_v44, 4  ;;  %v4116_v58 = vmax.f32 %v4062_v28, 0.0  ;;  %4179 = sbr.rel (!%p5161_p5) target bundleno = 688 (0x2b0), region = 36 }
 0x2a4   : > { %v4064_v60 = vpop.f32.mrf.mxu0  ;;  %v4783_v27 = vpop.f32.mrf.mxu1 }
 0x2a5   : > { %4159 = vst [vmem:[%s6376_s25 + $0x98] ss:$-84 sps:$4 sm:$0xff] %v4137_v12   ;;  %v4138_v35 = vrot.slane %v4116_v58, 4 }
 0x2a6   : > { %v4065_v32 = vpop.f32.mrf.mxu0 }
 0x2a7   : > { %4160 = vst [vmem:[%s6376_s25 + $0xa0] ss:$-84 sps:$4 sm:$0xff] %v4138_v35  }
 0x2aa   : > { %v4217_v3 = vld [vmem:[%s6376_s25 + $0x50] sm:$0xff]  ;;  %v4239_v30 = vld [vmem:[%s6376_s25 + $0xa8] sm:$0xff] }
 0x2ab   : > { %4218 = vst [vmem:[%s6429_s15 + $0x50] sm:$0xff] %v4217_v3  ;;  %4240 = vst [vmem:[%s6429_s15 + $0x100] sm:$0xff] %v4239_v30 }
 0x2ac   : > { %v4213_v41 = vld [vmem:[%s6376_s25 + $0x40] sm:$0xff]  ;;  %v4235_v9 = vld [vmem:[%s6376_s25 + $0x98] sm:$0xff] }
 0x2ad   : > { %4214 = vst [vmem:[%s6429_s15 + $0x40] sm:$0xff] %v4213_v41  ;;  %4236 = vst [vmem:[%s6429_s15 + $0xf0] sm:$0xff] %v4235_v9 }
 0x2ae   : > { %v4215_v2 = vld [vmem:[%s6376_s25 + $0x48] sm:$0xff]  ;;  %v4237_v7 = vld [vmem:[%s6376_s25 + $0xa0] sm:$0xff] }
 0x2af   : > { %4216 = vst [vmem:[%s6429_s15 + $0x48] sm:$0xff] %v4215_v2  ;;  %4238 = vst [vmem:[%s6429_s15 + $0xf8] sm:$0xff] %v4237_v7 }
 0x2b0 PF: > { %s13_s18 = sadd.s32 1, %s5064_s18   ;;  %s6658_s12 = smov %s5044_s13 }
 0x2b1   : > { %p10_p12 = scmp.ge.s32.totalorder %s13_s18, 6   ;;  %s6659_s13 = smov %s5172_s27 }
 0x2b2   : > { %s6660_s14 = smov %s5056_s16  ;;  %s6661_s15 = smov %s5060_s17 }
 0x2b3   : > { %s6662_s16 = smov %s6665_s19  ;;  %s6663_s17 = smov %s6669_s20 }
 0x2b4   :  { %12 = sbr.rel (!%p10_p12) target bundleno = 4 (0x4), region = 88 }

</bundles_post_ra>
